<compile_context>
chip_gen: v6e
topology: v6e:2x2x1
jax: 0.10.0
libtpu: 0.0.40
codegen_flags: <defaults>
</compile_context>

<pallas_src>
import jax
import jax.numpy as jnp
from jax import lax
from jax.experimental import pallas as pl
from jax.experimental.pallas import tpu as pltpu


# -----------------------------------------------------------------------------
# helpers
# -----------------------------------------------------------------------------
def _round_up(x, m):
    return (x + m - 1) // m * m


def _pick_row_tile(bn, cap):
    """Largest multiple-of-8 divisor of bn that is <= cap."""
    assert bn % 8 == 0, "B*N must be a multiple of 8"
    t = min(max(8, (cap // 8) * 8), bn)
    while bn % t:
        t -= 8
    return t


# -----------------------------------------------------------------------------
# Fused kernel: SharedMLP -> resid_loc (level 0 only) -> per-level grid_sample
# -----------------------------------------------------------------------------
def _make_spfp_kernel(num_layers, tile_rows, b_hmax):
    def kernel(meta_ref, x_ref, loc_ref, rowoff_ref, *refs):
        g_ref = refs[-1]                         # VMEM scratch (tile, 2): grid coords
        out_ref = refs[-2]                       # (tile, Cpad) revisited accumulator
        rest = refs[:-2]
        wrefs = rest[:2 * num_layers]
        wr_loc_ref, wr_h_ref, br_ref = rest[2 * num_layers:2 * num_layers + 3]
        img_ref, colw_ref, place_ref = rest[2 * num_layers + 3:]

        lvl = pl.program_id(1)

        # ---- SharedMLP (ReLU after every 1x1 conv) + resid_loc: once per row
        #      tile, on the first level iteration.  Grid coords -> VMEM scratch.
        @pl.when(lvl == 0)
        def _():
            h = x_ref[...]                                        # (tile, C0)
            for i in range(num_layers):
                w = wrefs[2 * i][...]
                bias = wrefs[2 * i + 1][...]
                h = jnp.maximum(
                    jnp.dot(h, w, preferred_element_type=jnp.float32) + bias, 0.0)
            g_ref[...] = (
                jnp.dot(loc_ref[...], wr_loc_ref[...],
                        preferred_element_type=jnp.float32)
                + jnp.dot(h, wr_h_ref[...], preferred_element_type=jnp.float32)
                + br_ref[...])                                    # (tile, 2)
            out_ref[...] = jnp.zeros_like(out_ref)                # accumulator init

        # ---- bilinear grid_sample (align_corners=False, border padding) for
        #      the current pyramid level, separable two-stage contraction. ----
        hf = meta_ref[lvl, 0].astype(jnp.float32)                 # H of this level
        wf = meta_ref[lvl, 1].astype(jnp.float32)                 # W of this level
        gx = g_ref[:, 0:1]                                        # x -> width
        gy = g_ref[:, 1:2]                                        # y -> height
        ix = jnp.clip(((gx + 1.0) * wf - 1.0) * 0.5, 0.0, wf - 1.0)
        iy = jnp.clip(((gy + 1.0) * hf - 1.0) * 0.5, 0.0, hf - 1.0)

        # Hat-function bilinear weights: relu(1 - |index - coord|).
        # Row weights are block-diagonal over the flattened (B*Hmax) image rows
        # (rowoff = batch * Hmax), so one matmul covers every batch in the tile.
        row_i = lax.broadcasted_iota(jnp.int32, (tile_rows, b_hmax), 1)
        wy = jnp.maximum(
            1.0 - jnp.abs(row_i.astype(jnp.float32) - (iy + rowoff_ref[...])), 0.0)
        tmp = jnp.dot(wy, img_ref[...],
                      preferred_element_type=jnp.float32)         # (tile, W*C pad)
        wx = jnp.maximum(1.0 - jnp.abs(colw_ref[...] - ix), 0.0)  # (tile, W*C pad)
        # Placement matmul sums over W and scatters this level's channels to its
        # offset in the lane-dense concatenated output; accumulate in-place.
        out_ref[...] += jnp.dot(wx * tmp, place_ref[...],
                                preferred_element_type=jnp.float32)

    return kernel


# -----------------------------------------------------------------------------
# SPFP forward (layout plumbing in plain JAX, all compute in one pallas_call)
# -----------------------------------------------------------------------------
def spfp_forward(x_loc, x_feat, x_to_pool_from, params, *,
                 row_tile_cap=512, channels_last=False):
    """x_loc: (B,3,N), x_feat: (B,Cf,N), x_to_pool_from: list of (B,Ci,Hi,Wi).
    Returns (B, sum(Ci), N) (PyTorch layout) or (B, N, sum(Ci)) if channels_last."""
    B, _, N = x_loc.shape
    BN = B * N
    tile = _pick_row_tile(BN, row_tile_cap)

    loc_t = jnp.transpose(x_loc, (0, 2, 1)).reshape(BN, 3).astype(jnp.float32)
    feat_t = jnp.transpose(x_feat, (0, 2, 1)).reshape(BN, -1).astype(jnp.float32)
    x_all = jnp.concatenate([loc_t, feat_t], axis=-1)             # (BN, C0)

    mlp_ws = params["mlp"]
    wr_loc, wr_h, br = params["resid"]
    num_layers = len(mlp_ws)

    levels = [(int(im.shape[1]), int(im.shape[2]), int(im.shape[3]))
              for im in x_to_pool_from]                           # (C, H, W)
    L = len(levels)
    ctot = sum(c for c, _, _ in levels)
    cpad = _round_up(ctot, 128)                                   # lane-dense output
    hmax = _round_up(max(h for _, h, _ in levels), 8)
    wcmax = _round_up(max(w * c for c, _, w in levels), 128)

    # Per-level streamed operands, padded to common shapes and stacked on a
    # leading level axis (the "arbitrary" grid axis indexes it).
    imgs, colws, places = [], [], []
    off = 0
    for im, (C, H, W) in zip(x_to_pool_from, levels):
        hwc = jnp.transpose(im, (0, 2, 3, 1)).reshape(B, H, W * C)
        hwc = jnp.pad(hwc.astype(jnp.float32),
                      ((0, 0), (0, hmax - H), (0, wcmax - W * C)))
        imgs.append(hwc.reshape(B * hmax, wcmax))                 # flattened rows
        k = jnp.arange(wcmax)
        valid = k < W * C
        colws.append(jnp.where(valid, k // C, -2)                 # -2 => zero weight
                     .astype(jnp.float32).reshape(1, wcmax))
        place = ((off + (k % C))[:, None] == jnp.arange(cpad)[None, :])
        places.append((place & valid[:, None]).astype(jnp.float32))
        off += C
    imgs = jnp.stack(imgs)          # (L, B*hmax, wcmax)
    colws = jnp.stack(colws)        # (L, 1, wcmax)
    places = jnp.stack(places)      # (L, wcmax, cpad)
    meta = jnp.array([(h, w) for _, h, w in levels], jnp.int32)   # (L, 2) -> SMEM
    rowoff = ((jnp.arange(BN) // N) * hmax).astype(jnp.float32).reshape(BN, 1)

    consts = []
    for w, bias in mlp_ws:
        consts += [w.astype(jnp.float32), bias.astype(jnp.float32)]
    consts += [wr_loc.astype(jnp.float32), wr_h.astype(jnp.float32),
               br.astype(jnp.float32)]

    def row_spec(cols):
        return pl.BlockSpec((tile, cols), lambda i, l, m: (i, 0))

    def const_spec(shape):
        nd = len(shape)
        return pl.BlockSpec(shape, lambda i, l, m, nd=nd: (0,) * nd)

    def level_spec(tail):
        nz = len(tail)
        return pl.BlockSpec((None,) + tail,
                            lambda i, l, m, nz=nz: (l,) + (0,) * nz)

    in_specs = ([row_spec(x_all.shape[1]), row_spec(3), row_spec(1)]
                + [const_spec(a.shape) for a in consts]
                + [level_spec((B * hmax, wcmax)),
                   level_spec((1, wcmax)),
                   level_spec((wcmax, cpad))])

    grid_spec = pltpu.PrefetchScalarGridSpec(
        num_scalar_prefetch=1,
        grid=(BN // tile, L),                 # rows "parallel", level "arbitrary"
        in_specs=in_specs,
        out_specs=pl.BlockSpec((tile, cpad), lambda i, l, m: (i, 0)),
        scratch_shapes=[pltpu.VMEM((tile, 2), jnp.float32)])

    out = pl.pallas_call(
        _make_spfp_kernel(num_layers, tile, B * hmax),
        out_shape=jax.ShapeDtypeStruct((BN, cpad), jnp.float32),
        grid_spec=grid_spec,
        compiler_params=pltpu.CompilerParams(
            dimension_semantics=("parallel", "arbitrary"),
            vmem_limit_bytes=48 * 1024 * 1024),
    )(meta, x_all, loc_t, rowoff, *consts, imgs, colws, places)

    out = out[:, :ctot].reshape(B, N, ctot)
    if channels_last:
        return out                                   # (B, N, Ctot): no transpose
    return jnp.transpose(out, (0, 2, 1))             # PyTorch layout (B, Ctot, N)


# -----------------------------------------------------------------------------
# Pure-JAX reference (PyTorch-equivalent) for verification
# -----------------------------------------------------------------------------
def spfp_reference(x_loc, x_feat, x_to_pool_from, params):
    B, _, N = x_loc.shape
    h = jnp.transpose(jnp.concatenate([x_loc, x_feat], axis=1), (0, 2, 1))
    for w, b in params["mlp"]:
        h = jnp.maximum(h @ w + b, 0.0)
    wr_loc, wr_h, br = params["resid"]
    loc = jnp.transpose(x_loc, (0, 2, 1))
    grid = loc @ wr_loc + h @ wr_h + br                                # (B, N, 2)

    outs = []
    for img in x_to_pool_from:
        _, C, H, W = img.shape
        gx, gy = grid[..., 0], grid[..., 1]
        ix = jnp.clip(((gx + 1.0) * W - 1.0) * 0.5, 0.0, W - 1.0)
        iy = jnp.clip(((gy + 1.0) * H - 1.0) * 0.5, 0.0, H - 1.0)
        x0f, y0f = jnp.floor(ix), jnp.floor(iy)
        wx1, wy1 = ix - x0f, iy - y0f
        x0, y0 = x0f.astype(jnp.int32), y0f.astype(jnp.int32)
        x1, y1 = jnp.minimum(x0 + 1, W - 1), jnp.minimum(y0 + 1, H - 1)
        flat = img.reshape(B, C, H * W)

        def gather(yi, xi):
            idx = (yi * W + xi)[:, None, :]                            # (B,1,N)
            return jnp.take_along_axis(flat, jnp.broadcast_to(idx, (B, C, N)), axis=2)

        v00, v01 = gather(y0, x0), gather(y0, x1)
        v10, v11 = gather(y1, x0), gather(y1, x1)
        wx1b, wy1b = wx1[:, None, :], wy1[:, None, :]
        out = ((1 - wy1b) * ((1 - wx1b) * v00 + wx1b * v01)
               + wy1b * ((1 - wx1b) * v10 + wx1b * v11))
        outs.append(out)
    return jnp.concatenate(outs, axis=1)


# -----------------------------------------------------------------------------
# Parameter init (module shapes; small random resid feature weights so the
# MLP -> grid -> grid_sample path is actually exercised end to end)
# -----------------------------------------------------------------------------
def init_params(key, channels):
    mlp = []
    for i in range(len(channels) - 1):
        key, k1, k2 = jax.random.split(key, 3)
        w = 0.1 * jax.random.normal(k1, (channels[i], channels[i + 1]), jnp.float32)
        b = 0.1 * jax.random.normal(k2, (1, channels[i + 1]), jnp.float32)
        mlp.append((w, b))
    key, k3, k4 = jax.random.split(key, 3)
    wr_loc = jnp.zeros((3, 2), jnp.float32).at[0, 0].set(1.0).at[1, 1].set(1.0)
    wr_h = 0.05 * jax.random.normal(k3, (channels[-1], 2), jnp.float32)
    br = 0.02 * jax.random.normal(k4, (1, 2), jnp.float32)
    return {"mlp": mlp, "resid": (wr_loc, wr_h, br)}


if __name__ == "__main__":
    B, N = 2, 64
    channels = [16, 32, 32]            # channels[0] = 3 (loc) + 13 (feat)
    Cf = channels[0] - 3

    key = jax.random.PRNGKey(0)
    key, kl, kf, k1, k2 = jax.random.split(key, 5)
    x_loc = jax.random.uniform(kl, (B, 3, N), jnp.float32, -1.0, 1.0)
    x_feat = jax.random.normal(kf, (B, Cf, N), jnp.float32)
    x_to_pool_from = [
        jax.random.normal(k1, (B, 4, 16, 16), jnp.float32),
        jax.random.normal(k2, (B, 6, 8, 8), jnp.float32),
    ]
    params = init_params(jax.random.PRNGKey(42), channels)

    out = spfp_forward(x_loc, x_feat, x_to_pool_from, params)
    out = jax.block_until_ready(out)

    ref = spfp_reference(x_loc, x_feat, x_to_pool_from, params)
    assert out.shape == (B, 4 + 6, N), out.shape
    err = float(jnp.max(jnp.abs(out - ref)))
    assert err < 1e-3, err

    print("KERNEL_OK")
</pallas_src>

<mosaic_0001>
module attributes {stable_mosaic.version = 11 : i64} {
  func.func @kernel(%arg0: i32, %arg1: i32, %arg2: memref<2x2xi32, #tpu.memory_space<smem>>, %arg3: memref<128x16xf32, #tpu.memory_space<vmem>>, %arg4: memref<128x3xf32, #tpu.memory_space<vmem>>, %arg5: memref<128x1xf32, #tpu.memory_space<vmem>>, %arg6: memref<16x32xf32, #tpu.memory_space<vmem>>, %arg7: memref<1x32xf32, #tpu.memory_space<vmem>>, %arg8: memref<32x32xf32, #tpu.memory_space<vmem>>, %arg9: memref<1x32xf32, #tpu.memory_space<vmem>>, %arg10: memref<3x2xf32, #tpu.memory_space<vmem>>, %arg11: memref<32x2xf32, #tpu.memory_space<vmem>>, %arg12: memref<1x2xf32, #tpu.memory_space<vmem>>, %arg13: memref<1x32x128xf32, #tpu.memory_space<vmem>>, %arg14: memref<1x1x128xf32, #tpu.memory_space<vmem>>, %arg15: memref<1x128x128xf32, #tpu.memory_space<vmem>>, %arg16: memref<128x128xf32, #tpu.memory_space<vmem>>, %arg17: memref<128x2xf32, #tpu.memory_space<vmem>>) attributes {dimension_semantics = [#tpu.dimension_semantics<parallel>, #tpu.dimension_semantics<arbitrary>], iteration_bounds = array<i64: 1, 2>, scalar_prefetch = 1 : i64, scratch_operands = 1 : i64, tpu.core_type = #tpu.core_type<tc>, window_params = [{transform_indices = @transform_0, window_bounds = array<i64: 128, 16>}, {transform_indices = @transform_1, window_bounds = array<i64: 128, 3>}, {transform_indices = @transform_2, window_bounds = array<i64: 128, 1>}, {pipeline_mode = #tpu.pipeline_mode<synchronous>, transform_indices = @transform_3, window_bounds = array<i64: 16, 32>}, {pipeline_mode = #tpu.pipeline_mode<synchronous>, transform_indices = @transform_4, window_bounds = array<i64: 1, 32>}, {pipeline_mode = #tpu.pipeline_mode<synchronous>, transform_indices = @transform_5, window_bounds = array<i64: 32, 32>}, {pipeline_mode = #tpu.pipeline_mode<synchronous>, transform_indices = @transform_6, window_bounds = array<i64: 1, 32>}, {pipeline_mode = #tpu.pipeline_mode<synchronous>, transform_indices = @transform_7, window_bounds = array<i64: 3, 2>}, {pipeline_mode = #tpu.pipeline_mode<synchronous>, transform_indices = @transform_8, window_bounds = array<i64: 32, 2>}, {pipeline_mode = #tpu.pipeline_mode<synchronous>, transform_indices = @transform_9, window_bounds = array<i64: 1, 2>}, {transform_indices = @transform_10, window_bounds = array<i64: 1, 32, 128>}, {transform_indices = @transform_11, window_bounds = array<i64: 1, 1, 128>}, {transform_indices = @transform_12, window_bounds = array<i64: 1, 128, 128>}, {transform_indices = @transform_13, window_bounds = array<i64: 128, 128>}]} {
    %c0_i32 = arith.constant 0 : i32
    %0 = arith.cmpi eq, %arg1, %c0_i32 : i32
    %1 = arith.extui %0 : i1 to i32
    %c0_i32_0 = arith.constant 0 : i32
    %2 = arith.cmpi ne, %1, %c0_i32_0 : i32
    scf.if %2 {
      %c0_35 = arith.constant 0 : index
      %c0_36 = arith.constant 0 : index
      %68 = vector.load %arg3[%c0_35, %c0_36] : memref<128x16xf32, #tpu.memory_space<vmem>>, vector<128x16xf32>
      %c0_37 = arith.constant 0 : index
      %c0_38 = arith.constant 0 : index
      %69 = vector.load %arg6[%c0_37, %c0_38] : memref<16x32xf32, #tpu.memory_space<vmem>>, vector<16x32xf32>
      %c0_39 = arith.constant 0 : index
      %c0_40 = arith.constant 0 : index
      %70 = vector.load %arg7[%c0_39, %c0_40] : memref<1x32xf32, #tpu.memory_space<vmem>>, vector<1x32xf32>
      %cst_41 = arith.constant dense<0.000000e+00> : vector<128x32xf32>
      %71 = tpu.matmul %68, %69, %cst_41 {dimension_numbers = #tpu.dot_dimension_numbers<[1], [0], [0], [1], [0, 0, 1, 1], [], []>} : vector<128x16xf32>, vector<16x32xf32>, vector<128x32xf32> -> vector<128x32xf32>
      %72 = vector.broadcast %70 : vector<1x32xf32> to vector<128x32xf32>
      %73 = arith.addf %71, %72 : vector<128x32xf32>
      %cst_42 = arith.constant 0.000000e+00 : f32
      %74 = vector.broadcast %cst_42 : f32 to vector<128x32xf32>
      %75 = arith.maximumf %73, %74 : vector<128x32xf32>
      %c0_43 = arith.constant 0 : index
      %c0_44 = arith.constant 0 : index
      %76 = vector.load %arg8[%c0_43, %c0_44] : memref<32x32xf32, #tpu.memory_space<vmem>>, vector<32x32xf32>
      %c0_45 = arith.constant 0 : index
      %c0_46 = arith.constant 0 : index
      %77 = vector.load %arg9[%c0_45, %c0_46] : memref<1x32xf32, #tpu.memory_space<vmem>>, vector<1x32xf32>
      %cst_47 = arith.constant dense<0.000000e+00> : vector<128x32xf32>
      %78 = tpu.matmul %75, %76, %cst_47 {dimension_numbers = #tpu.dot_dimension_numbers<[1], [0], [0], [1], [0, 0, 1, 1], [], []>} : vector<128x32xf32>, vector<32x32xf32>, vector<128x32xf32> -> vector<128x32xf32>
      %79 = vector.broadcast %77 : vector<1x32xf32> to vector<128x32xf32>
      %80 = arith.addf %78, %79 : vector<128x32xf32>
      %cst_48 = arith.constant 0.000000e+00 : f32
      %81 = vector.broadcast %cst_48 : f32 to vector<128x32xf32>
      %82 = arith.maximumf %80, %81 : vector<128x32xf32>
      %c0_49 = arith.constant 0 : index
      %c0_50 = arith.constant 0 : index
      %83 = vector.load %arg4[%c0_49, %c0_50] : memref<128x3xf32, #tpu.memory_space<vmem>>, vector<128x3xf32>
      %c0_51 = arith.constant 0 : index
      %c0_52 = arith.constant 0 : index
      %84 = vector.load %arg10[%c0_51, %c0_52] : memref<3x2xf32, #tpu.memory_space<vmem>>, vector<3x2xf32>
      %cst_53 = arith.constant dense<0.000000e+00> : vector<128x2xf32>
      %85 = tpu.matmul %83, %84, %cst_53 {dimension_numbers = #tpu.dot_dimension_numbers<[1], [0], [0], [1], [0, 0, 1, 1], [], []>} : vector<128x3xf32>, vector<3x2xf32>, vector<128x2xf32> -> vector<128x2xf32>
      %c0_54 = arith.constant 0 : index
      %c0_55 = arith.constant 0 : index
      %86 = vector.load %arg11[%c0_54, %c0_55] : memref<32x2xf32, #tpu.memory_space<vmem>>, vector<32x2xf32>
      %cst_56 = arith.constant dense<0.000000e+00> : vector<128x2xf32>
      %87 = tpu.matmul %82, %86, %cst_56 {dimension_numbers = #tpu.dot_dimension_numbers<[1], [0], [0], [1], [0, 0, 1, 1], [], []>} : vector<128x32xf32>, vector<32x2xf32>, vector<128x2xf32> -> vector<128x2xf32>
      %88 = arith.addf %85, %87 : vector<128x2xf32>
      %c0_57 = arith.constant 0 : index
      %c0_58 = arith.constant 0 : index
      %89 = vector.load %arg12[%c0_57, %c0_58] : memref<1x2xf32, #tpu.memory_space<vmem>>, vector<1x2xf32>
      %90 = vector.broadcast %89 : vector<1x2xf32> to vector<128x2xf32>
      %91 = arith.addf %88, %90 : vector<128x2xf32>
      %c0_59 = arith.constant 0 : index
      %c0_60 = arith.constant 0 : index
      %92 = vector.load %arg17[%c0_59, %c0_60] : memref<128x2xf32, #tpu.memory_space<vmem>>, vector<128x2xf32>
      tpu.vector_store %arg17[%c0_59, %c0_60], %91 {strides = array<i32>} : memref<128x2xf32, #tpu.memory_space<vmem>>, vector<128x2xf32>,
      %cst_61 = arith.constant 0.000000e+00 : f32
      %93 = vector.broadcast %cst_61 : f32 to vector<128x128xf32>
      %c0_62 = arith.constant 0 : index
      %c0_63 = arith.constant 0 : index
      %94 = vector.load %arg16[%c0_62, %c0_63] : memref<128x128xf32, #tpu.memory_space<vmem>>, vector<128x128xf32>
      tpu.vector_store %arg16[%c0_62, %c0_63], %93 {strides = array<i32>} : memref<128x128xf32, #tpu.memory_space<vmem>>, vector<128x128xf32>,
    } else {
    }
    %3 = arith.index_cast %arg1 : i32 to index
    %c0 = arith.constant 0 : index
    %4 = memref.load %arg2[%3, %c0] : memref<2x2xi32, #tpu.memory_space<smem>>
    %5 = arith.sitofp %4 : i32 to f32
    %6 = arith.index_cast %arg1 : i32 to index
    %c1 = arith.constant 1 : index
    %7 = memref.load %arg2[%6, %c1] : memref<2x2xi32, #tpu.memory_space<smem>>
    %8 = arith.sitofp %7 : i32 to f32
    %c0_1 = arith.constant 0 : index
    %c0_2 = arith.constant 0 : index
    %9 = vector.load %arg17[%c0_1, %c0_2] : memref<128x2xf32, #tpu.memory_space<vmem>>, vector<128x1xf32>
    %c0_3 = arith.constant 0 : index
    %c1_4 = arith.constant 1 : index
    %10 = vector.load %arg17[%c0_3, %c1_4] : memref<128x2xf32, #tpu.memory_space<vmem>>, vector<128x1xf32>
    %cst = arith.constant 1.000000e+00 : f32
    %11 = vector.broadcast %cst : f32 to vector<128x1xf32>
    %12 = arith.addf %9, %11 : vector<128x1xf32>
    %13 = vector.broadcast %8 : f32 to vector<128x1xf32>
    %14 = arith.mulf %12, %13 : vector<128x1xf32>
    %cst_5 = arith.constant 1.000000e+00 : f32
    %15 = vector.broadcast %cst_5 : f32 to vector<128x1xf32>
    %16 = arith.subf %14, %15 : vector<128x1xf32>
    %cst_6 = arith.constant 5.000000e-01 : f32
    %17 = vector.broadcast %cst_6 : f32 to vector<128x1xf32>
    %18 = arith.mulf %16, %17 : vector<128x1xf32>
    %cst_7 = arith.constant 1.000000e+00 : f32
    %19 = arith.subf %8, %cst_7 : f32
    %cst_8 = arith.constant 0.000000e+00 : f32
    %20 = vector.broadcast %cst_8 : f32 to vector<128x1xf32>
    %21 = arith.maximumf %20, %18 : vector<128x1xf32>
    %22 = vector.broadcast %19 : f32 to vector<128x1xf32>
    %23 = arith.minimumf %22, %21 : vector<128x1xf32>
    %cst_9 = arith.constant 1.000000e+00 : f32
    %24 = vector.broadcast %cst_9 : f32 to vector<128x1xf32>
    %25 = arith.addf %10, %24 : vector<128x1xf32>
    %26 = vector.broadcast %5 : f32 to vector<128x1xf32>
    %27 = arith.mulf %25, %26 : vector<128x1xf32>
    %cst_10 = arith.constant 1.000000e+00 : f32
    %28 = vector.broadcast %cst_10 : f32 to vector<128x1xf32>
    %29 = arith.subf %27, %28 : vector<128x1xf32>
    %cst_11 = arith.constant 5.000000e-01 : f32
    %30 = vector.broadcast %cst_11 : f32 to vector<128x1xf32>
    %31 = arith.mulf %29, %30 : vector<128x1xf32>
    %cst_12 = arith.constant 1.000000e+00 : f32
    %32 = arith.subf %5, %cst_12 : f32
    %cst_13 = arith.constant 0.000000e+00 : f32
    %33 = vector.broadcast %cst_13 : f32 to vector<128x1xf32>
    %34 = arith.maximumf %33, %31 : vector<128x1xf32>
    %35 = vector.broadcast %32 : f32 to vector<128x1xf32>
    %36 = arith.minimumf %35, %34 : vector<128x1xf32>
    %37 = tpu.iota {dimensions = array<i32: 1>} : vector<128x32xi32>
    %38 = arith.sitofp %37 : vector<128x32xi32> to vector<128x32xf32>
    %c0_14 = arith.constant 0 : index
    %c0_15 = arith.constant 0 : index
    %39 = vector.load %arg5[%c0_14, %c0_15] : memref<128x1xf32, #tpu.memory_space<vmem>>, vector<128x1xf32>
    %40 = arith.addf %36, %39 : vector<128x1xf32>
    %41 = vector.broadcast %40 : vector<128x1xf32> to vector<128x32xf32>
    %42 = arith.subf %38, %41 : vector<128x32xf32>
    %43 = math.absf %42 : vector<128x32xf32>
    %cst_16 = arith.constant 1.000000e+00 : f32
    %44 = vector.broadcast %cst_16 : f32 to vector<128x32xf32>
    %45 = arith.subf %44, %43 : vector<128x32xf32>
    %cst_17 = arith.constant 0.000000e+00 : f32
    %46 = vector.broadcast %cst_17 : f32 to vector<128x32xf32>
    %47 = arith.maximumf %45, %46 : vector<128x32xf32>
    %c0_18 = arith.constant 0 : index
    %c0_19 = arith.constant 0 : index
    %c0_20 = arith.constant 0 : index
    %48 = vector.load %arg13[%c0_18, %c0_19, %c0_20] : memref<1x32x128xf32, #tpu.memory_space<vmem>>, vector<1x32x128xf32>
    %49 = vector.shape_cast %48 : vector<1x32x128xf32> to vector<32x128xf32>
    %cst_21 = arith.constant dense<0.000000e+00> : vector<128x128xf32>
    %50 = tpu.matmul %47, %49, %cst_21 {dimension_numbers = #tpu.dot_dimension_numbers<[1], [0], [0], [1], [0, 0, 1, 1], [], []>} : vector<128x32xf32>, vector<32x128xf32>, vector<128x128xf32> -> vector<128x128xf32>
    %c0_22 = arith.constant 0 : index
    %c0_23 = arith.constant 0 : index
    %c0_24 = arith.constant 0 : index
    %51 = vector.load %arg14[%c0_22, %c0_23, %c0_24] : memref<1x1x128xf32, #tpu.memory_space<vmem>>, vector<1x1x128xf32>
    %52 = vector.shape_cast %51 : vector<1x1x128xf32> to vector<1x128xf32>
    %53 = vector.broadcast %52 : vector<1x128xf32> to vector<128x128xf32>
    %54 = vector.broadcast %23 : vector<128x1xf32> to vector<128x128xf32>
    %55 = arith.subf %53, %54 : vector<128x128xf32>
    %56 = math.absf %55 : vector<128x128xf32>
    %cst_25 = arith.constant 1.000000e+00 : f32
    %57 = vector.broadcast %cst_25 : f32 to vector<128x128xf32>
    %58 = arith.subf %57, %56 : vector<128x128xf32>
    %cst_26 = arith.constant 0.000000e+00 : f32
    %59 = vector.broadcast %cst_26 : f32 to vector<128x128xf32>
    %60 = arith.maximumf %58, %59 : vector<128x128xf32>
    %c0_27 = arith.constant 0 : index
    %c0_28 = arith.constant 0 : index
    %61 = vector.load %arg16[%c0_27, %c0_28] : memref<128x128xf32, #tpu.memory_space<vmem>>, vector<128x128xf32>
    %62 = arith.mulf %60, %50 : vector<128x128xf32>
    %c0_29 = arith.constant 0 : index
    %c0_30 = arith.constant 0 : index
    %c0_31 = arith.constant 0 : index
    %63 = vector.load %arg15[%c0_29, %c0_30, %c0_31] : memref<1x128x128xf32, #tpu.memory_space<vmem>>, vector<1x128x128xf32>
    %64 = vector.shape_cast %63 : vector<1x128x128xf32> to vector<128x128xf32>
    %cst_32 = arith.constant dense<0.000000e+00> : vector<128x128xf32>
    %65 = tpu.matmul %62, %64, %cst_32 {dimension_numbers = #tpu.dot_dimension_numbers<[1], [0], [0], [1], [0, 0, 1, 1], [], []>} : vector<128x128xf32>, vector<128x128xf32>, vector<128x128xf32> -> vector<128x128xf32>
    %66 = arith.addf %61, %65 : vector<128x128xf32>
    %c0_33 = arith.constant 0 : index
    %c0_34 = arith.constant 0 : index
    %67 = vector.load %arg16[%c0_33, %c0_34] : memref<128x128xf32, #tpu.memory_space<vmem>>, vector<128x128xf32>
    tpu.vector_store %arg16[%c0_33, %c0_34], %66 {strides = array<i32>} : memref<128x128xf32, #tpu.memory_space<vmem>>, vector<128x128xf32>,
    return
  }
  func.func @transform_0(%arg0: i32, %arg1: i32, %arg2: memref<2x2xi32, #tpu.memory_space<smem>>) -> (i32, i32) {
    %c0_i32 = arith.constant 0 : i32
    %c0_i32_0 = arith.constant 0 : i32
    return %arg0, %c0_i32 : i32, i32
  }
  func.func @transform_1(%arg0: i32, %arg1: i32, %arg2: memref<2x2xi32, #tpu.memory_space<smem>>) -> (i32, i32) {
    %c0_i32 = arith.constant 0 : i32
    %c0_i32_0 = arith.constant 0 : i32
    return %arg0, %c0_i32 : i32, i32
  }
  func.func @transform_2(%arg0: i32, %arg1: i32, %arg2: memref<2x2xi32, #tpu.memory_space<smem>>) -> (i32, i32) {
    %c0_i32 = arith.constant 0 : i32
    %c0_i32_0 = arith.constant 0 : i32
    return %arg0, %c0_i32 : i32, i32
  }
  func.func @transform_3(%arg0: i32, %arg1: i32, %arg2: memref<2x2xi32, #tpu.memory_space<smem>>) -> (i32, i32) {
    %c0_i32 = arith.constant 0 : i32
    %c0_i32_0 = arith.constant 0 : i32
    %c0_i32_1 = arith.constant 0 : i32
    return %c0_i32, %c0_i32_0 : i32, i32
  }
  func.func @transform_4(%arg0: i32, %arg1: i32, %arg2: memref<2x2xi32, #tpu.memory_space<smem>>) -> (i32, i32) {
    %c0_i32 = arith.constant 0 : i32
    %c0_i32_0 = arith.constant 0 : i32
    %c0_i32_1 = arith.constant 0 : i32
    return %c0_i32, %c0_i32_0 : i32, i32
  }
  func.func @transform_5(%arg0: i32, %arg1: i32, %arg2: memref<2x2xi32, #tpu.memory_space<smem>>) -> (i32, i32) {
    %c0_i32 = arith.constant 0 : i32
    %c0_i32_0 = arith.constant 0 : i32
    %c0_i32_1 = arith.constant 0 : i32
    return %c0_i32, %c0_i32_0 : i32, i32
  }
  func.func @transform_6(%arg0: i32, %arg1: i32, %arg2: memref<2x2xi32, #tpu.memory_space<smem>>) -> (i32, i32) {
    %c0_i32 = arith.constant 0 : i32
    %c0_i32_0 = arith.constant 0 : i32
    %c0_i32_1 = arith.constant 0 : i32
    return %c0_i32, %c0_i32_0 : i32, i32
  }
  func.func @transform_7(%arg0: i32, %arg1: i32, %arg2: memref<2x2xi32, #tpu.memory_space<smem>>) -> (i32, i32) {
    %c0_i32 = arith.constant 0 : i32
    %c0_i32_0 = arith.constant 0 : i32
    %c0_i32_1 = arith.constant 0 : i32
    return %c0_i32, %c0_i32_0 : i32, i32
  }
  func.func @transform_8(%arg0: i32, %arg1: i32, %arg2: memref<2x2xi32, #tpu.memory_space<smem>>) -> (i32, i32) {
    %c0_i32 = arith.constant 0 : i32
    %c0_i32_0 = arith.constant 0 : i32
    %c0_i32_1 = arith.constant 0 : i32
    return %c0_i32, %c0_i32_0 : i32, i32
  }
  func.func @transform_9(%arg0: i32, %arg1: i32, %arg2: memref<2x2xi32, #tpu.memory_space<smem>>) -> (i32, i32) {
    %c0_i32 = arith.constant 0 : i32
    %c0_i32_0 = arith.constant 0 : i32
    %c0_i32_1 = arith.constant 0 : i32
    return %c0_i32, %c0_i32_0 : i32, i32
  }
  func.func @transform_10(%arg0: i32, %arg1: i32, %arg2: memref<2x2xi32, #tpu.memory_space<smem>>) -> (i32, i32, i32) {
    %c0_i32 = arith.constant 0 : i32
    %c0_i32_0 = arith.constant 0 : i32
    %c0_i32_1 = arith.constant 0 : i32
    return %arg1, %c0_i32, %c0_i32_0 : i32, i32, i32
  }
  func.func @transform_11(%arg0: i32, %arg1: i32, %arg2: memref<2x2xi32, #tpu.memory_space<smem>>) -> (i32, i32, i32) {
    %c0_i32 = arith.constant 0 : i32
    %c0_i32_0 = arith.constant 0 : i32
    %c0_i32_1 = arith.constant 0 : i32
    return %arg1, %c0_i32, %c0_i32_0 : i32, i32, i32
  }
  func.func @transform_12(%arg0: i32, %arg1: i32, %arg2: memref<2x2xi32, #tpu.memory_space<smem>>) -> (i32, i32, i32) {
    %c0_i32 = arith.constant 0 : i32
    %c0_i32_0 = arith.constant 0 : i32
    %c0_i32_1 = arith.constant 0 : i32
    return %arg1, %c0_i32, %c0_i32_0 : i32, i32, i32
  }
  func.func @transform_13(%arg0: i32, %arg1: i32, %arg2: memref<2x2xi32, #tpu.memory_space<smem>>) -> (i32, i32) {
    %c0_i32 = arith.constant 0 : i32
    %c0_i32_0 = arith.constant 0 : i32
    return %arg0, %c0_i32 : i32, i32
  }
}

</mosaic_0001>

<bundles_post_ra>
// kernel: tpu_custom_call.1
= control target key start
LH: loop header
LB: loop body
LE: loop exit
PB: predicated region body
PF: predicated region fallthrough
CT: control target
= control target key end

     0   :  { %s3992_s0 = inlined_call_operand.vmem [shape: s32[2,2], index: 0, kind: input, shape index: {}]   ;;  %s3993_s1 = inlined_call_operand.vmem [shape: f32[128,16], index: 1, kind: input, shape index: {}]   ;;  %s3994_s2 = inlined_call_operand.vmem [shape: f32[128,3], index: 2, kind: input, shape index: {}]   ;;  %s3995_s3 = inlined_call_operand.vmem [shape: f32[128,1], index: 3, kind: input, shape index: {}]   ;;  %s3996_s4 = inlined_call_operand.vmem [shape: f32[16,32], index: 4, kind: input, shape index: {}]   ;;  %s3997_s5 = inlined_call_operand.vmem [shape: f32[1,32], index: 5, kind: input, shape index: {}]   ;;  %s3998_s6 = inlined_call_operand.vmem [shape: f32[32,32], index: 6, kind: input, shape index: {}]   ;;  %s3999_s7 = inlined_call_operand.vmem [shape: f32[1,32], index: 7, kind: input, shape index: {}]   ;;  %s4000_s8 = inlined_call_operand.vmem [shape: f32[3,2], index: 8, kind: input, shape index: {}]   ;;  %s4001_s9 = inlined_call_operand.vmem [shape: f32[32,2], index: 9, kind: input, shape index: {}]   ;;  %s4002_s10 = inlined_call_operand.vmem [shape: f32[1,2], index: 10, kind: input, shape index: {}]   ;;  %s4003_s11 = inlined_call_operand.vmem [shape: f32[2,32,128], index: 11, kind: input, shape index: {}]   ;;  %s4004_s12 = inlined_call_operand.vmem [shape: f32[2,1,128], index: 12, kind: input, shape index: {}]   ;;  %s4005_s13 = inlined_call_operand.vmem [shape: f32[2,128,128], index: 13, kind: input, shape index: {}]   ;;  %s4006_s14 = inlined_call_operand.hbm [shape: f32[128,128], index: 14, kind: output, shape index: {}]  }
   0x1   :  { %s19_s15 = sshll.u32 %s3992_s0, 4  ;;  %s20_s15 = int_to_ptr.vmem [resolvable:$true] %s19_s15 }
   0x2   :  { %s3174_s16 = scalar_lea.vmem %s20_s15, 32  ;;  %p3179_p1 = scmp.lt.s32.totalorder %s20_s15, %s20_s15 }
   0x3   :  { %p3175_p0 = scmp.ne.s32.totalorder %s20_s15, %s3174_s16  ;;  %p3180_p2 = scmp.lt.s32.totalorder %s3174_s16, %s3174_s16 }
   0x5   :  { %p3181_p3 = por %p3180_p2, %p3179_p1 }
   0x7   :  { %p3182_p4 = pnand %p3181_p3, %p3175_p0 }
   0x9   :  { %3185 = shalt.err (!%p3182_p4)  }
   0xa   :  { %s3240_s17 = smov [#allocation4]  }
   0xb   :  { %22 = dma.vmem_to_smem %s20_s15, 32, %s3240_s17, [#allocation3] }
   0xc   :  { %3222 = dma.done.wait [#allocation3], 32 }
   0xd   :  { %3223 = vsyncadd [#allocation3], 4294967264 }
   0xe   :  { %24 = sfence }
   0xf   :  { %25 = vsyncpa [#allocation6], 0  ;;  %s3326_s18 = smov 0   ;;  %s3328_s19 = smov 0  }
  0x10   :  { %s3330_s20 = smov 0  }
  0x11 LB: > { %s40_s21 = sadd.s32 1, %s3234_s19  ;;  %p2635_p6 = scmp.ge.s32.totalorder %s3238_s20, 1  ;;  %s3238_s20 = sphi %s3330_s20, %s31_s20   ;;  %s3234_s19 = sphi %s3328_s19, %s4012_s19   ;;  %s3230_s18 = sphi %s3326_s18, %s4011_s18  }
  0x12   : > { %p41_p5 = scmp.ge.s32.totalorder %s40_s21, 2  ;;  %p458_p7 = scmp.lt.s32.totalorder %s3238_s20, 3 }
  0x14   : > { %s4014_s21 = smov (%p41_p5, %s40_s21), 0  ;;  %p459_p8 = pnand %p2635_p6, %p458_p7 }
  0x15   : > { %4007 = sst [smem:[#allocation9_spill]] %s4014_s21  ;;  %p538_p9 = scmp.lt.s32.totalorder (!%p459_p8), %s3230_s18, 1 }
  0x16   : > { %462 = sbr.rel (%p459_p8) target bundleno = 1350 (0x546), region = 72  ;;  %p2640_p10 = scmp.ne.s32.totalorder (!%p459_p8), %s3230_s18, 0 }
  0x1b   : > { %s3349_s22 = scalar_select %p538_p9, %s3230_s18, 1 }
  0x1c   : > { %555 = sbr.rel (%p2640_p10) target bundleno = 666 (0x29a), region = 76 }
  0x1d   : > { %s2765_s23 = sshll.u32 %s3349_s22, 5  ;;  %s545_s26 = scalar_lea.vmem %s4004_s12, %s3349_s22 }
  0x1e   : > { %s3359_s29 = scalar_lea.vmem %s4003_s11, %s2765_s23  ;;  %s2766_s30 = sshll.u32 %s3349_s22, 7 }
  0x1f   : > { %s3365_s17 = scalar_lea.vmem %s4005_s13, %s2766_s30 }
  0x21   : > { %v573_v0 = vld [vmem:[%s3996_s4 + $0x8] sm:$0xff]  ;;  %v572_v1 = vld [vmem:[%s3996_s4] sm:$0xff]  ;;  %vm581_vm0 = vcmask 130048   ;;  %v558_v4 = vld [vmem:[%s3993_s1 + $0x10] sm:$0xff]  ;;  %vm1275_vm1 = vcmask 1042432   ;;  %vm802_vm2 = vcmask 261120  }
  0x22   : > { %v556_v2 = vld [vmem:[%s3993_s1] sm:$0xff]  ;;  %2894 = vmatprep.subr.mxu0 %v573_v0  ;;  %v557_v3 = vld [vmem:[%s3993_s1 + $0x8] sm:$0xff]  ;;  %v559_v5 = vld [vmem:[%s3993_s1 + $0x18] sm:$0xff]  ;;  %vm1226_vm3 = vcmask 23552   ;;  %vm1447_vm4 = vcmask 15360  }
  0x23   : > { %2898 = vmatprep.mubr.msk.f32.mxu0 %vm581_vm0, %v556_v2  ;;  %2895 = vmatpush3.msra.mxu0 %v573_v0  ;;  %v560_v6 = vld [vmem:[%s3993_s1 + $0x20] sm:$0xff]  ;;  %v561_v7 = vld [vmem:[%s3993_s1 + $0x28] sm:$0xff]  ;;  %v562_v8 = vld [vmem:[%s3993_s1 + $0x30] sm:$0xff] }
  0x24   : > { %2896 = vmatprep.subr.mxu0 %v572_v1  ;;  %v563_v9 = vld [vmem:[%s3993_s1 + $0x38] sm:$0xff]  ;;  %v564_v10 = vld [vmem:[%s3993_s1 + $0x40] sm:$0xff]  ;;  %v565_v11 = vld [vmem:[%s3993_s1 + $0x48] sm:$0xff] }
  0x25   : > { %2897 = vmatpush3.msra.mxu0 %v572_v1  ;;  %v566_v12 = vld [vmem:[%s3993_s1 + $0x50] sm:$0xff]  ;;  %v567_v13 = vld [vmem:[%s3993_s1 + $0x58] sm:$0xff]  ;;  %v568_v14 = vld [vmem:[%s3993_s1 + $0x60] sm:$0xff] }
  0x26   : > { %2899 = vmatmul.mubr.msk.f32.vlgmr.msra.gmra.mxu0 %vm581_vm0, %v557_v3  ;;  %v569_v15 = vld [vmem:[%s3993_s1 + $0x68] sm:$0xff]  ;;  %v570_v16 = vld [vmem:[%s3993_s1 + $0x70] sm:$0xff]  ;;  %v571_v17 = vld [vmem:[%s3993_s1 + $0x78] sm:$0xff] }
  0x27   : > { %2901 = vmatprep.mubr.msk.f32.mxu0 %vm581_vm0, %v558_v4  ;;  %v794_v18 = vld [vmem:[%s3998_s6 + $0x18] sm:$0xff]  ;;  %v793_v19 = vld [vmem:[%s3998_s6 + $0x10] sm:$0xff]  ;;  %v792_v20 = vld [vmem:[%s3998_s6 + $0x8] sm:$0xff] }
  0x28   : > { %2922 = vmatprep.subr.mxu1 %v794_v18  ;;  %v791_v21 = vld [vmem:[%s3998_s6] sm:$0xff]  ;;  %v1032_v22 = vld [vmem:[%s4001_s9 + $0x18] sm:$0xff]  ;;  %v1031_v24 = vld [vmem:[%s4001_s9 + $0x10] sm:$0xff] }
  0x29   : > { %2923 = vmatpush3.msra.mxu1 %v794_v18  ;;  %v1028_v23 = vld [vmem:[%s4000_s8] sm:$0x7]  ;;  %2954 = vmatprep.subr.mxu0 %v1032_v22  ;;  %v1030_v25 = vld [vmem:[%s4001_s9 + $0x8] sm:$0xff]  ;;  %v1018_v18 = vld [vmem:[%s3994_s2 + $0x30] sm:$0xff] }
  0x2a   : > { %2902 = vmatmul.mubr.msk.f32.gmra.mxu0 %vm581_vm0, %v559_v5  ;;  %2924 = vmatprep.subr.mxu1 %v793_v19  ;;  %v1029_v26 = vld [vmem:[%s4001_s9] sm:$0xff] }
  0x2b   : > { %2904 = vmatprep.mubr.msk.f32.mxu0 %vm581_vm0, %v560_v6  ;;  %2925 = vmatpush3.msra.mxu1 %v793_v19  ;;  %v2641_v27 = vld [vmem:[%s3997_s5] ss:$0 sm:$0xff]  ;;  %v1019_v19 = vld [vmem:[%s3994_s2 + $0x38] sm:$0xff] }
  0x2c   : > { %2926 = vmatprep.subr.mxu1 %v792_v20  ;;  %2955 = vmatpush3.msra.mxu0 %v1032_v22  ;;  %v1022_v22 = vld [vmem:[%s3994_s2 + $0x50] sm:$0xff] }
  0x2d   : > { %2927 = vmatpush3.msra.mxu1 %v792_v20  ;;  %2956 = vmatprep.subr.mxu0 %v1031_v24  ;;  %v1020_v20 = vld [vmem:[%s3994_s2 + $0x40] sm:$0xff] }
  0x2e   : > { %2905 = vmatmul.mubr.msk.f32.gmra.mxu0 %vm581_vm0, %v561_v7  ;;  %2928 = vmatprep.subr.mxu1 %v791_v21 }
  0x2f   : > { %2907 = vmatprep.mubr.msk.f32.mxu0 %vm581_vm0, %v562_v8  ;;  %2929 = vmatpush3.msra.mxu1 %v791_v21  ;;  %v1021_v21 = vld [vmem:[%s3994_s2 + $0x48] sm:$0xff] }
  0x30   : > { %2986 = vmatprep.subr.msk.mxu1 %vm1275_vm1, %v1028_v23  ;;  %2957 = vmatpush3.msra.mxu0 %v1031_v24  ;;  %v1024_v24 = vld [vmem:[%s3994_s2 + $0x60] sm:$0xff] }
  0x31   : > { %2958 = vmatprep.subr.mxu0 %v1030_v25 }
  0x32   : > { %2908 = vmatmul.mubr.msk.f32.gmra.mxu0 %vm581_vm0, %v563_v9 }
  0x33   : > { %2910 = vmatprep.mubr.msk.f32.mxu0 %vm581_vm0, %v564_v10  ;;  %2959 = vmatpush3.msra.mxu0 %v1030_v25  ;;  %v1025_v25 = vld [vmem:[%s3994_s2 + $0x68] sm:$0xff] }
  0x34   : > { %2960 = vmatprep.subr.mxu0 %v1029_v26 }
  0x35   : > { %2961 = vmatpush3.msra.mxu0 %v1029_v26  ;;  %v1026_v26 = vld [vmem:[%s3994_s2 + $0x70] sm:$0xff] }
  0x36   : > { %2911 = vmatmul.mubr.msk.f32.gmra.mxu0 %vm581_vm0, %v565_v11 }
  0x37   : > { %2913 = vmatprep.mubr.msk.f32.mxu0 %vm581_vm0, %v566_v12  ;;  %v1012_v12 = vld [vmem:[%s3994_s2] sm:$0xff] }
  0x3a   : > { %2914 = vmatmul.mubr.msk.f32.gmra.mxu0 %vm581_vm0, %v567_v13  ;;  %v1013_v13 = vld [vmem:[%s3994_s2 + $0x8] sm:$0xff] }
  0x3b   : > { %2916 = vmatprep.mubr.msk.f32.mxu0 %vm581_vm0, %v568_v14  ;;  %v1014_v14 = vld [vmem:[%s3994_s2 + $0x10] sm:$0xff] }
  0x3e   : > { %2917 = vmatmul.mubr.msk.f32.gmra.mxu0 %vm581_vm0, %v569_v15  ;;  %v1015_v15 = vld [vmem:[%s3994_s2 + $0x18] sm:$0xff] }
  0x3f   : > { %2919 = vmatprep.mubr.msk.f32.mxu0 %vm581_vm0, %v570_v16  ;;  %v1016_v16 = vld [vmem:[%s3994_s2 + $0x20] sm:$0xff] }
  0x42   : > { %2920 = vmatmul.mubr.msk.f32.gmra.mxu0 %vm581_vm0, %v571_v17  ;;  %v1017_v17 = vld [vmem:[%s3994_s2 + $0x28] sm:$0xff] }
  0xe6   : > { %v2900_v28 = vpop.f32.mrf.mxu0 }
  0xe7   : > { %v702_v29 = vadd.f32 %v2900_v28, %v2641_v27  ;;  %v2658_v28 = vld [vmem:[%s3999_s7] ss:$0 sm:$0xff] }
  0xe8   : > { %v696_v30 = vpop.f32.mrf.mxu0 }
  0xe9   : > { %v697_v31 = vadd.f32 %v2641_v27, %v696_v30  ;;  %v776_v34 = vmax.f32 %v702_v29, 0.0 }
  0xea   : > { %v2903_v32 = vpop.f32.mrf.mxu0 }
  0xeb   : > { %v775_v33 = vmax.f32 %v697_v31, 0.0  ;;  %v712_v35 = vadd.f32 %v2903_v32, %v2641_v27 }
  0xec   : > { %v706_v36 = vpop.f32.mrf.mxu0 }
  0xed   : > { %v707_v37 = vadd.f32 %v2641_v27, %v706_v36  ;;  %2930 = vmatprep.mubr.msk.f32.mxu1 %vm802_vm2, %v775_v33  ;;  %v778_v40 = vmax.f32 %v712_v35, 0.0 }
  0xee   : > { %v2906_v38 = vpop.f32.mrf.mxu0  ;;  %2931 = vmatmul.mubr.msk.f32.vlgmr.msra.gmra.mxu1 %vm802_vm2, %v776_v34 }
  0xef   : > { %v777_v39 = vmax.f32 %v707_v37, 0.0  ;;  %2987 = vmatpush3.msk.msra.mxu1 %vm1275_vm1, %v1028_v23  ;;  %v722_v41 = vadd.f32 %v2906_v38, %v2641_v27  ;;  %v1023_v23 = vld [vmem:[%s3994_s2 + $0x58] sm:$0xff] }
  0xf0   : > { %v716_v42 = vpop.f32.mrf.mxu0 }
  0xf1   : > { %v717_v43 = vadd.f32 %v2641_v27, %v716_v42  ;;  %2933 = vmatprep.mubr.msk.f32.mxu1 %vm802_vm2, %v777_v39  ;;  %v780_v46 = vmax.f32 %v722_v41, 0.0 }
  0xf2   : > { %v2909_v44 = vpop.f32.mrf.mxu0  ;;  %2934 = vmatmul.mubr.msk.f32.gmra.mxu1 %vm802_vm2, %v778_v40 }
  0xf3   : > { %v779_v45 = vmax.f32 %v717_v43, 0.0  ;;  %v732_v47 = vadd.f32 %v2909_v44, %v2641_v27 }
  0xf4   : > { %v726_v48 = vpop.f32.mrf.mxu0 }
  0xf5   : > { %v727_v49 = vadd.f32 %v2641_v27, %v726_v48  ;;  %2936 = vmatprep.mubr.msk.f32.mxu1 %vm802_vm2, %v779_v45  ;;  %v782_v52 = vmax.f32 %v732_v47, 0.0 }
  0xf6   : > { %v2912_v50 = vpop.f32.mrf.mxu0  ;;  %2937 = vmatmul.mubr.msk.f32.gmra.mxu1 %vm802_vm2, %v780_v46 }
  0xf7   : > { %v781_v51 = vmax.f32 %v727_v49, 0.0  ;;  %v742_v53 = vadd.f32 %v2912_v50, %v2641_v27 }
  0xf8   : > { %v736_v54 = vpop.f32.mrf.mxu0 }
  0xf9   : > { %v737_v55 = vadd.f32 %v2641_v27, %v736_v54  ;;  %2939 = vmatprep.mubr.msk.f32.mxu1 %vm802_vm2, %v781_v51  ;;  %v784_v58 = vmax.f32 %v742_v53, 0.0 }
  0xfa   : > { %v2915_v56 = vpop.f32.mrf.mxu0  ;;  %2940 = vmatmul.mubr.msk.f32.gmra.mxu1 %vm802_vm2, %v782_v52 }
  0xfb   : > { %v783_v57 = vmax.f32 %v737_v55, 0.0  ;;  %v752_v59 = vadd.f32 %v2915_v56, %v2641_v27 }
  0xfc   : > { %v746_v60 = vpop.f32.mrf.mxu0 }
  0xfd   : > { %v747_v61 = vadd.f32 %v2641_v27, %v746_v60  ;;  %2942 = vmatprep.mubr.msk.f32.mxu1 %vm802_vm2, %v783_v57  ;;  %v786_v0 = vmax.f32 %v752_v59, 0.0 }
  0xfe   : > { %v2918_v62 = vpop.f32.mrf.mxu0  ;;  %2943 = vmatmul.mubr.msk.f32.gmra.mxu1 %vm802_vm2, %v784_v58 }
  0xff   : > { %v785_v63 = vmax.f32 %v747_v61, 0.0  ;;  %v762_v1 = vadd.f32 %v2918_v62, %v2641_v27 }
 0x100   : > { %v756_v2 = vpop.f32.mrf.mxu0 }
 0x101   : > { %v757_v3 = vadd.f32 %v2641_v27, %v756_v2  ;;  %2945 = vmatprep.mubr.msk.f32.mxu1 %vm802_vm2, %v785_v63  ;;  %v788_v6 = vmax.f32 %v762_v1, 0.0 }
 0x102   : > { %v2921_v4 = vpop.f32.mrf.mxu0  ;;  %2946 = vmatmul.mubr.msk.f32.gmra.mxu1 %vm802_vm2, %v786_v0 }
 0x103   : > { %v787_v5 = vmax.f32 %v757_v3, 0.0  ;;  %v772_v7 = vadd.f32 %v2921_v4, %v2641_v27 }
 0x104   : > { %v766_v8 = vpop.f32.mrf.mxu0 }
 0x105   : > { %v767_v9 = vadd.f32 %v2641_v27, %v766_v8  ;;  %2948 = vmatprep.mubr.msk.f32.mxu1 %vm802_vm2, %v787_v5  ;;  %v790_v11 = vmax.f32 %v772_v7, 0.0  ;;  %v1027_v27 = vld [vmem:[%s3994_s2 + $0x78] sm:$0xff] }
 0x106   : > { %2949 = vmatmul.mubr.msk.f32.gmra.mxu1 %vm802_vm2, %v788_v6 }
 0x107   : > { %v789_v10 = vmax.f32 %v767_v9, 0.0 }
 0x109   : > { %2951 = vmatprep.mubr.msk.f32.mxu1 %vm802_vm2, %v789_v10 }
 0x10a   : > { %2952 = vmatmul.mubr.msk.f32.gmra.mxu1 %vm802_vm2, %v790_v11 }
 0x10b   : > { %2988 = vmatprep.mubr.msk.f32.mxu1 %vm1226_vm3, %v1012_v12 }
 0x10e   : > { %2989 = vmatmul.mubr.msk.f32.vlgmr.msra.gmra.mxu1 %vm1226_vm3, %v1013_v13  ;;  %v3241_v13 = vmov 0.0  }
 0x10f   : > { %2991 = vmatprep.mubr.msk.f32.mxu1 %vm1226_vm3, %v1014_v14  ;;  %1464 = vst [vmem:[#allocation5] sm:$0xff] %v3241_v13  ;;  %1465 = vst [vmem:[#allocation5 + $0x8] sm:$0xff] %v3241_v13 }
 0x110   : > { %1466 = vst [vmem:[#allocation5 + $0x10] sm:$0xff] %v3241_v13  ;;  %1467 = vst [vmem:[#allocation5 + $0x18] sm:$0xff] %v3241_v13 }
 0x111   : > { %1468 = vst [vmem:[#allocation5 + $0x20] sm:$0xff] %v3241_v13  ;;  %1469 = vst [vmem:[#allocation5 + $0x28] sm:$0xff] %v3241_v13 }
 0x112   : > { %2992 = vmatmul.mubr.msk.f32.gmra.mxu1 %vm1226_vm3, %v1015_v15  ;;  %1470 = vst [vmem:[#allocation5 + $0x30] sm:$0xff] %v3241_v13  ;;  %1471 = vst [vmem:[#allocation5 + $0x38] sm:$0xff] %v3241_v13 }
 0x113   : > { %2994 = vmatprep.mubr.msk.f32.mxu1 %vm1226_vm3, %v1016_v16  ;;  %1472 = vst [vmem:[#allocation5 + $0x40] sm:$0xff] %v3241_v13  ;;  %1473 = vst [vmem:[#allocation5 + $0x48] sm:$0xff] %v3241_v13 }
 0x114   : > { %1474 = vst [vmem:[#allocation5 + $0x50] sm:$0xff] %v3241_v13  ;;  %1475 = vst [vmem:[#allocation5 + $0x58] sm:$0xff] %v3241_v13 }
 0x115   : > { %1476 = vst [vmem:[#allocation5 + $0x60] sm:$0xff] %v3241_v13  ;;  %1477 = vst [vmem:[#allocation5 + $0x68] sm:$0xff] %v3241_v13 }
 0x116   : > { %2995 = vmatmul.mubr.msk.f32.gmra.mxu1 %vm1226_vm3, %v1017_v17  ;;  %1478 = vst [vmem:[#allocation5 + $0x70] sm:$0xff] %v3241_v13  ;;  %1479 = vst [vmem:[#allocation5 + $0x78] sm:$0xff] %v3241_v13 }
 0x117   : > { %2997 = vmatprep.mubr.msk.f32.mxu1 %vm1226_vm3, %v1018_v18 }
 0x11a   : > { %2998 = vmatmul.mubr.msk.f32.gmra.mxu1 %vm1226_vm3, %v1019_v19 }
 0x11b   : > { %3000 = vmatprep.mubr.msk.f32.mxu1 %vm1226_vm3, %v1020_v20 }
 0x11e   : > { %3001 = vmatmul.mubr.msk.f32.gmra.mxu1 %vm1226_vm3, %v1021_v21 }
 0x11f   : > { %3003 = vmatprep.mubr.msk.f32.mxu1 %vm1226_vm3, %v1022_v22 }
 0x122   : > { %3004 = vmatmul.mubr.msk.f32.gmra.mxu1 %vm1226_vm3, %v1023_v23  ;;  %v3572_v23 = vld [vmem:[%s4002_s10] ss:$0 sm:$0xff] }
 0x123   : > { %3006 = vmatprep.mubr.msk.f32.mxu1 %vm1226_vm3, %v1024_v24 }
 0x126   : > { %3007 = vmatmul.mubr.msk.f32.gmra.mxu1 %vm1226_vm3, %v1025_v25 }
 0x127   : > { %3009 = vmatprep.mubr.msk.f32.mxu1 %vm1226_vm3, %v1026_v26 }
 0x12a   : > { %3010 = vmatmul.mubr.msk.f32.gmra.mxu1 %vm1226_vm3, %v1027_v27 }
 0x1ae   : > { %v2932_v29 = vpop.f32.mrf.mxu1 }
 0x1af   : > { %v923_v30 = vadd.f32 %v2932_v29, %v2658_v28 }
 0x1b0   : > { %v917_v31 = vpop.f32.mrf.mxu1 }
 0x1b1   : > { %v918_v32 = vadd.f32 %v2658_v28, %v917_v31  ;;  %v997_v35 = vmax.f32 %v923_v30, 0.0 }
 0x1b2   : > { %v2935_v33 = vpop.f32.mrf.mxu1 }
 0x1b3   : > { %v996_v34 = vmax.f32 %v918_v32, 0.0  ;;  %v933_v36 = vadd.f32 %v2935_v33, %v2658_v28 }
 0x1b4   : > { %v927_v37 = vpop.f32.mrf.mxu1 }
 0x1b5   : > { %v928_v38 = vadd.f32 %v2658_v28, %v927_v37  ;;  %2962 = vmatprep.mubr.msk.f32.mxu0 %vm802_vm2, %v996_v34  ;;  %v999_v41 = vmax.f32 %v933_v36, 0.0 }
 0x1b6   : > { %v2938_v39 = vpop.f32.mrf.mxu1  ;;  %2963 = vmatmul.mubr.msk.f32.vlgmr.msra.gmra.mxu0 %vm802_vm2, %v997_v35 }
 0x1b7   : > { %v998_v40 = vmax.f32 %v928_v38, 0.0  ;;  %v943_v42 = vadd.f32 %v2938_v39, %v2658_v28 }
 0x1b8   : > { %v937_v43 = vpop.f32.mrf.mxu1 }
 0x1b9   : > { %v938_v44 = vadd.f32 %v2658_v28, %v937_v43  ;;  %2965 = vmatprep.mubr.msk.f32.mxu0 %vm802_vm2, %v998_v40  ;;  %v1001_v47 = vmax.f32 %v943_v42, 0.0 }
 0x1ba   : > { %v2941_v45 = vpop.f32.mrf.mxu1  ;;  %2966 = vmatmul.mubr.msk.f32.gmra.mxu0 %vm802_vm2, %v999_v41 }
 0x1bb   : > { %v1000_v46 = vmax.f32 %v938_v44, 0.0  ;;  %v953_v48 = vadd.f32 %v2941_v45, %v2658_v28 }
 0x1bc   : > { %v947_v49 = vpop.f32.mrf.mxu1 }
 0x1bd   : > { %v948_v50 = vadd.f32 %v2658_v28, %v947_v49  ;;  %2968 = vmatprep.mubr.msk.f32.mxu0 %vm802_vm2, %v1000_v46  ;;  %v1003_v53 = vmax.f32 %v953_v48, 0.0 }
 0x1be   : > { %v2944_v51 = vpop.f32.mrf.mxu1  ;;  %2969 = vmatmul.mubr.msk.f32.gmra.mxu0 %vm802_vm2, %v1001_v47 }
 0x1bf   : > { %v1002_v52 = vmax.f32 %v948_v50, 0.0  ;;  %v963_v54 = vadd.f32 %v2944_v51, %v2658_v28 }
 0x1c0   : > { %v957_v55 = vpop.f32.mrf.mxu1 }
 0x1c1   : > { %v958_v56 = vadd.f32 %v2658_v28, %v957_v55  ;;  %2971 = vmatprep.mubr.msk.f32.mxu0 %vm802_vm2, %v1002_v52  ;;  %v1005_v59 = vmax.f32 %v963_v54, 0.0 }
 0x1c2   : > { %v2947_v57 = vpop.f32.mrf.mxu1  ;;  %2972 = vmatmul.mubr.msk.f32.gmra.mxu0 %vm802_vm2, %v1003_v53 }
 0x1c3   : > { %v1004_v58 = vmax.f32 %v958_v56, 0.0  ;;  %v973_v60 = vadd.f32 %v2947_v57, %v2658_v28 }
 0x1c4   : > { %v967_v61 = vpop.f32.mrf.mxu1 }
 0x1c5   : > { %v968_v62 = vadd.f32 %v2658_v28, %v967_v61  ;;  %2974 = vmatprep.mubr.msk.f32.mxu0 %vm802_vm2, %v1004_v58  ;;  %v1007_v1 = vmax.f32 %v973_v60, 0.0 }
 0x1c6   : > { %v2950_v63 = vpop.f32.mrf.mxu1  ;;  %2975 = vmatmul.mubr.msk.f32.gmra.mxu0 %vm802_vm2, %v1005_v59 }
 0x1c7   : > { %v1006_v0 = vmax.f32 %v968_v62, 0.0  ;;  %v983_v2 = vadd.f32 %v2950_v63, %v2658_v28 }
 0x1c8   : > { %v977_v3 = vpop.f32.mrf.mxu1 }
 0x1c9   : > { %v978_v4 = vadd.f32 %v2658_v28, %v977_v3  ;;  %2977 = vmatprep.mubr.msk.f32.mxu0 %vm802_vm2, %v1006_v0  ;;  %v1009_v7 = vmax.f32 %v983_v2, 0.0 }
 0x1ca   : > { %v2953_v5 = vpop.f32.mrf.mxu1  ;;  %2978 = vmatmul.mubr.msk.f32.gmra.mxu0 %vm802_vm2, %v1007_v1 }
 0x1cb   : > { %v1008_v6 = vmax.f32 %v978_v4, 0.0  ;;  %v993_v8 = vadd.f32 %v2953_v5, %v2658_v28 }
 0x1cc   : > { %v987_v9 = vpop.f32.mrf.mxu1 }
 0x1cd   : > { %v988_v10 = vadd.f32 %v2658_v28, %v987_v9  ;;  %2980 = vmatprep.mubr.msk.f32.mxu0 %vm802_vm2, %v1008_v6  ;;  %v1011_v12 = vmax.f32 %v993_v8, 0.0 }
 0x1ce   : > { %2981 = vmatmul.mubr.msk.f32.gmra.mxu0 %vm802_vm2, %v1009_v7  ;;  %v2990_v14 = vpop.f32.mrf.mxu1 }
 0x1cf   : > { %v1010_v11 = vmax.f32 %v988_v10, 0.0 }
 0x1d0   : > { %v1345_v15 = vpop.f32.mrf.mxu1 }
 0x1d1   : > { %2983 = vmatprep.mubr.msk.f32.mxu0 %vm802_vm2, %v1010_v11 }
 0x1d2   : > { %2984 = vmatmul.mubr.msk.f32.gmra.mxu0 %vm802_vm2, %v1011_v12  ;;  %v2993_v16 = vpop.f32.mrf.mxu1 }
 0x1d4   : > { %v1355_v17 = vpop.f32.mrf.mxu1 }
 0x1d6   : > { %v2996_v18 = vpop.f32.mrf.mxu1 }
 0x1d8   : > { %v1365_v19 = vpop.f32.mrf.mxu1 }
 0x1da   : > { %v2999_v20 = vpop.f32.mrf.mxu1 }
 0x1dc   : > { %v1375_v21 = vpop.f32.mrf.mxu1 }
 0x1de   : > { %v3002_v26 = vpop.f32.mrf.mxu1 }
 0x1e0   : > { %v1385_v33 = vpop.f32.mrf.mxu1 }
 0x1e2   : > { %v3005_v40 = vpop.f32.mrf.mxu1 }
 0x1e4   : > { %v1395_v47 = vpop.f32.mrf.mxu1 }
 0x1e6   : > { %v3008_v54 = vpop.f32.mrf.mxu1 }
 0x1e8   : > { %v1405_v61 = vpop.f32.mrf.mxu1 }
 0x1ea   : > { %v3011_v4 = vpop.f32.mrf.mxu1 }
 0x1ec   : > { %v1415_v10 = vpop.f32.mrf.mxu1 }
 0x276   : > { %v2964_v22 = vpop.f32.mrf.mxu0 }
 0x277   : > { %v1351_v24 = vadd.f32 %v2990_v14, %v2964_v22 }
 0x278   : > { %v1147_v25 = vpop.f32.mrf.mxu0 }
 0x279   : > { %v1432_v27 = vadd.f32 %v3572_v23, %v1351_v24  ;;  %v1346_v28 = vadd.f32 %v1345_v15, %v1147_v25 }
 0x27a   : > { %v2967_v29 = vpop.f32.mrf.mxu0 }
 0x27b   : > { %1449 = vst.msk [vmem:[#allocation2 + $0x8] sm:$0xff] %vm1447_vm4, %v1432_v27  ;;  %v1431_v30 = vadd.f32 %v3572_v23, %v1346_v28  ;;  %v1361_v31 = vadd.f32 %v2993_v16, %v2967_v29 }
 0x27c   : > { %v1157_v32 = vpop.f32.mrf.mxu0 }
 0x27d   : > { %1448 = vst.msk [vmem:[#allocation2] sm:$0xff] %vm1447_vm4, %v1431_v30  ;;  %v1434_v34 = vadd.f32 %v3572_v23, %v1361_v31  ;;  %v1356_v35 = vadd.f32 %v1355_v17, %v1157_v32 }
 0x27e   : > { %v2970_v36 = vpop.f32.mrf.mxu0 }
 0x27f   : > { %1451 = vst.msk [vmem:[#allocation2 + $0x18] sm:$0xff] %vm1447_vm4, %v1434_v34  ;;  %v1433_v37 = vadd.f32 %v3572_v23, %v1356_v35  ;;  %v1371_v38 = vadd.f32 %v2996_v18, %v2970_v36 }
 0x280   : > { %v1167_v39 = vpop.f32.mrf.mxu0 }
 0x281   : > { %1450 = vst.msk [vmem:[#allocation2 + $0x10] sm:$0xff] %vm1447_vm4, %v1433_v37  ;;  %v1436_v41 = vadd.f32 %v3572_v23, %v1371_v38  ;;  %v1366_v42 = vadd.f32 %v1365_v19, %v1167_v39 }
 0x282   : > { %v2973_v43 = vpop.f32.mrf.mxu0 }
 0x283   : > { %1453 = vst.msk [vmem:[#allocation2 + $0x28] sm:$0xff] %vm1447_vm4, %v1436_v41  ;;  %v1435_v44 = vadd.f32 %v3572_v23, %v1366_v42  ;;  %v1381_v45 = vadd.f32 %v2999_v20, %v2973_v43 }
 0x284   : > { %v1177_v46 = vpop.f32.mrf.mxu0 }
 0x285   : > { %1452 = vst.msk [vmem:[#allocation2 + $0x20] sm:$0xff] %vm1447_vm4, %v1435_v44  ;;  %v1438_v48 = vadd.f32 %v3572_v23, %v1381_v45  ;;  %v1376_v49 = vadd.f32 %v1375_v21, %v1177_v46 }
 0x286   : > { %v2976_v50 = vpop.f32.mrf.mxu0 }
 0x287   : > { %1455 = vst.msk [vmem:[#allocation2 + $0x38] sm:$0xff] %vm1447_vm4, %v1438_v48  ;;  %v1437_v51 = vadd.f32 %v3572_v23, %v1376_v49  ;;  %v1391_v52 = vadd.f32 %v3002_v26, %v2976_v50 }
 0x288   : > { %v1187_v53 = vpop.f32.mrf.mxu0 }
 0x289   : > { %1454 = vst.msk [vmem:[#allocation2 + $0x30] sm:$0xff] %vm1447_vm4, %v1437_v51  ;;  %v1440_v55 = vadd.f32 %v3572_v23, %v1391_v52  ;;  %v1386_v56 = vadd.f32 %v1385_v33, %v1187_v53 }
 0x28a   : > { %v2979_v57 = vpop.f32.mrf.mxu0 }
 0x28b   : > { %1457 = vst.msk [vmem:[#allocation2 + $0x48] sm:$0xff] %vm1447_vm4, %v1440_v55  ;;  %v1439_v58 = vadd.f32 %v3572_v23, %v1386_v56  ;;  %v1401_v59 = vadd.f32 %v3005_v40, %v2979_v57 }
 0x28c   : > { %v1197_v60 = vpop.f32.mrf.mxu0 }
 0x28d   : > { %1456 = vst.msk [vmem:[#allocation2 + $0x40] sm:$0xff] %vm1447_vm4, %v1439_v58  ;;  %v1442_v62 = vadd.f32 %v3572_v23, %v1401_v59  ;;  %v1396_v63 = vadd.f32 %v1395_v47, %v1197_v60 }
 0x28e   : > { %v2982_v0 = vpop.f32.mrf.mxu0 }
 0x28f   : > { %1459 = vst.msk [vmem:[#allocation2 + $0x58] sm:$0xff] %vm1447_vm4, %v1442_v62  ;;  %v1441_v1 = vadd.f32 %v3572_v23, %v1396_v63  ;;  %v1411_v2 = vadd.f32 %v3008_v54, %v2982_v0 }
 0x290   : > { %v1207_v3 = vpop.f32.mrf.mxu0 }
 0x291   : > { %1458 = vst.msk [vmem:[#allocation2 + $0x50] sm:$0xff] %vm1447_vm4, %v1441_v1  ;;  %v1444_v5 = vadd.f32 %v3572_v23, %v1411_v2  ;;  %v1406_v6 = vadd.f32 %v1405_v61, %v1207_v3 }
 0x292   : > { %v2985_v7 = vpop.f32.mrf.mxu0 }
 0x293   : > { %1461 = vst.msk [vmem:[#allocation2 + $0x68] sm:$0xff] %vm1447_vm4, %v1444_v5  ;;  %v1443_v8 = vadd.f32 %v3572_v23, %v1406_v6  ;;  %v1421_v9 = vadd.f32 %v3011_v4, %v2985_v7 }
 0x294   : > { %v1217_v11 = vpop.f32.mrf.mxu0 }
 0x295   : > { %1460 = vst.msk [vmem:[#allocation2 + $0x60] sm:$0xff] %vm1447_vm4, %v1443_v8  ;;  %v1446_v12 = vadd.f32 %v3572_v23, %v1421_v9  ;;  %v1416_v13 = vadd.f32 %v1415_v10, %v1217_v11 }
 0x297   : > { %1463 = vst.msk [vmem:[#allocation2 + $0x78] sm:$0xff] %vm1447_vm4, %v1446_v12  ;;  %v1445_v14 = vadd.f32 %v3572_v23, %v1416_v13 }
 0x299   : > { %1462 = vst.msk [vmem:[#allocation2 + $0x70] sm:$0xff] %vm1447_vm4, %v1445_v14 }
 0x29a PF: > { %v1689_v15 = vld [vmem:[%s3995_s3 + $0x10] sm:$0xff]  ;;  %v1687_v16 = vld [vmem:[%s3995_s3] sm:$0xff]  ;;  %s3242_s28 = smov 1   ;;  %v1690_v17 = vld [vmem:[%s3995_s3 + $0x18] sm:$0xff]  ;;  %v3243_v19 = vmov 1   ;;  %s2709_s0 = sshll.u32 %s3230_s18, 7 }
 0x29b   : > { %1723 = vrot.lane.b32.xlu1 %v1689_v15, %s3242_s28  ;;  %1719 = vrot.lane.b32.xlu0 %v1687_v16, %s3242_s28  ;;  %v1688_v18 = vld [vmem:[%s3995_s3 + $0x8] sm:$0xff]  ;;  %v1691_v21 = vld [vmem:[%s3995_s3 + $0x20] sm:$0xff]  ;;  %s1481_s21 = sld [smem:[#allocation4 + %s2709_s0]]  ;;  %v1489_v34 = vld [vmem:[#allocation2 + $0x18] sm:$0xff]  ;;  %vm1931_vm5 = vcmask 261120   ;;  %s3245_s22 = smov [#allocation5]  }
 0x29c   : > { %3170 = vset.pattern.permute.xlu0 %v3243_v19  ;;  %3171 = vset.pattern.permute.xlu1 %v3243_v19  ;;  %v1692_v20 = vld [vmem:[%s3995_s3 + $0x28] sm:$0xff]  ;;  %v1694_v22 = vld [vmem:[%s3995_s3 + $0x38] sm:$0xff]  ;;  %v1693_v23 = vld [vmem:[%s3995_s3 + $0x30] sm:$0xff]  ;;  %v3677_v37 = vadd.f32 1.0, %v1489_v34 }
 0x29d   : > { %v1696_v24 = vld [vmem:[%s3995_s3 + $0x48] sm:$0xff]  ;;  %v1695_v25 = vld [vmem:[%s3995_s3 + $0x40] sm:$0xff]  ;;  %v1698_v26 = vld [vmem:[%s3995_s3 + $0x58] sm:$0xff] }
 0x29e   : > { %v1697_v27 = vld [vmem:[%s3995_s3 + $0x50] sm:$0xff]  ;;  %v1700_v28 = vld [vmem:[%s3995_s3 + $0x68] sm:$0xff]  ;;  %v1699_v29 = vld [vmem:[%s3995_s3 + $0x60] sm:$0xff] }
 0x29f   : > { %1725 = vrot.lane.b32.xlu1 %v1690_v17, %s3242_s28  ;;  %1721 = vrot.lane.b32.xlu0 %v1688_v18, %s3242_s28  ;;  %v1702_v30 = vld [vmem:[%s3995_s3 + $0x78] sm:$0xff]  ;;  %v1701_v31 = vld [vmem:[%s3995_s3 + $0x70] sm:$0xff]  ;;  %v1486_v32 = vld [vmem:[#allocation2] sm:$0xff] }
 0x2a0   : > { %v3673_v33 = vadd.f32 1.0, %v1486_v32  ;;  %v1487_v36 = vld [vmem:[#allocation2 + $0x8] sm:$0xff]  ;;  %v1488_v38 = vld [vmem:[#allocation2 + $0x10] sm:$0xff]  ;;  %v1493_v42 = vld [vmem:[#allocation2 + $0x38] sm:$0xff] }
 0x2a1   : > { %s1482_s15 = scvt.s32.f32 %s1481_s21  ;;  %v3681_v40 = vadd.f32 1.0, %v1487_v36  ;;  %v1491_v41 = vld [vmem:[#allocation2 + $0x28] sm:$0xff]  ;;  %v3683_v43 = vadd.f32 1.0, %v1488_v38  ;;  %v1490_v46 = vld [vmem:[#allocation2 + $0x20] sm:$0xff]  ;;  %v3691_v49 = vadd.f32 1.0, %v1493_v42  ;;  %v1492_v54 = vld [vmem:[#allocation2 + $0x30] sm:$0xff] }
 0x2a2   : > { %v3687_v45 = vadd.f32 1.0, %v1491_v41  ;;  %v3693_v50 = vadd.f32 1.0, %v1490_v46  ;;  %v1495_v57 = vld [vmem:[#allocation2 + $0x48] sm:$0xff]  ;;  %v3703_v60 = vadd.f32 1.0, %v1492_v54  ;;  %v1494_v1 = vld [vmem:[#allocation2 + $0x40] sm:$0xff]  ;;  %v1497_v6 = vld [vmem:[#allocation2 + $0x58] sm:$0xff] }
 0x2a3   : > { %1729 = vrot.lane.b32.xlu1 %v1692_v20, %s3242_s28  ;;  %1727 = vrot.lane.b32.xlu0 %v1691_v21, %s3242_s28  ;;  %v3675_v35 = vstv %s1482_s15  ;;  %v3705_v0 = vadd.f32 1.0, %v1495_v57  ;;  %v3711_v9 = vadd.f32 1.0, %v1494_v1  ;;  %v1496_v14 = vld [vmem:[#allocation2 + $0x50] sm:$0xff]  ;;  %v3716_v17 = vadd.f32 1.0, %v1497_v6  ;;  %v1499_v19 = vld [vmem:[#allocation2 + $0x68] sm:$0xff]  ;;  %v1501_v38 = vld [vmem:[#allocation2 + $0x78] sm:$0xff] }
 0x2a4   : > { %v1602_v39 = vmul.f32 %v3675_v35, %v3673_v33  ;;  %v1605_v44 = vmul.f32 %v3675_v35, %v3677_v37  ;;  %v1603_v48 = vmul.f32 %v3675_v35, %v3681_v40  ;;  %v1604_v51 = vmul.f32 %v3675_v35, %v3683_v43  ;;  %v1930_v42 = vld [vmem:[%s3359_s29 + $0x18] sm:$0xff] }
 0x2a5   : > { %v1607_v53 = vmul.f32 %v3675_v35, %v3687_v45  ;;  %v1609_v58 = vmul.f32 %v3675_v35, %v3691_v49  ;;  %v1606_v59 = vmul.f32 %v3675_v35, %v3693_v50  ;;  %v1608_v8 = vmul.f32 %v3675_v35, %v3703_v60  ;;  %3012 = vmatprep.subr.mxu0 %v1930_v42 }
 0x2a6   : > { %v2727_v47 = vadd.f32 -1.0, %v1602_v39  ;;  %v2730_v52 = vadd.f32 -1.0, %v1605_v44  ;;  %v2728_v56 = vadd.f32 -1.0, %v1603_v48  ;;  %v2729_v61 = vadd.f32 -1.0, %v1604_v51  ;;  %v1500_v51 = vld [vmem:[#allocation2 + $0x70] sm:$0xff]  ;;  %3013 = vmatpush3.msra.mxu0 %v1930_v42 }
 0x2a7   : > { %1733 = vrot.lane.b32.xlu1 %v1694_v22, %s3242_s28  ;;  %1731 = vrot.lane.b32.xlu0 %v1693_v23, %s3242_s28  ;;  %v2732_v63 = vadd.f32 -1.0, %v1607_v53  ;;  %v2734_v5 = vadd.f32 -1.0, %v1609_v58  ;;  %v2731_v7 = vadd.f32 -1.0, %v1606_v59  ;;  %v1611_v13 = vmul.f32 %v3675_v35, %v3705_v0  ;;  %v1929_v58 = vld [vmem:[%s3359_s29 + $0x10] sm:$0xff] }
 0x2a8   : > { %v1634_v55 = vmul.f32 0.5, %v2727_v47  ;;  %v1637_v62 = vmul.f32 0.5, %v2730_v52  ;;  %v1635_v3 = vmul.f32 0.5, %v2728_v56  ;;  %v1636_v10 = vmul.f32 0.5, %v2729_v61  ;;  %3014 = vmatprep.subr.mxu0 %v1929_v58 }
 0x2a9   : > { %v1639_v12 = vmul.f32 0.5, %v2732_v63  ;;  %v1641_v18 = vmul.f32 0.5, %v2734_v5  ;;  %v1638_v20 = vmul.f32 0.5, %v2731_v7  ;;  %v2733_v21 = vadd.f32 -1.0, %v1608_v8  ;;  %3015 = vmatpush3.msra.mxu0 %v1929_v58 }
 0x2aa   : > { %v1651_v2 = vmax.f32 %v1634_v55, 0.0  ;;  %v1654_v11 = vmax.f32 %v1637_v62, 0.0  ;;  %v1652_v16 = vmax.f32 %v1635_v3, 0.0  ;;  %v1610_v22 = vmul.f32 %v3675_v35, %v3711_v9  ;;  %v1928_v3 = vld [vmem:[%s3359_s29 + $0x8] sm:$0xff] }
 0x2ab   : > { %1737 = vrot.lane.b32.xlu1 %v1696_v24, %s3242_s28  ;;  %1735 = vrot.lane.b32.xlu0 %v1695_v25, %s3242_s28  ;;  %v3720_v23 = vadd.f32 1.0, %v1496_v14  ;;  %v1498_v24 = vld [vmem:[#allocation2 + $0x60] sm:$0xff]  ;;  %v1613_v34 = vmul.f32 %v3675_v35, %v3716_v17  ;;  %v3726_v36 = vadd.f32 1.0, %v1499_v19  ;;  %v1658_v39 = vmax.f32 %v1641_v18, 0.0 }
 0x2ac   : > { %v3728_v41 = vadd.f32 1.0, %v1498_v24  ;;  %v1655_v44 = vmax.f32 %v1638_v20, 0.0  ;;  %v1640_v46 = vmul.f32 0.5, %v2733_v21  ;;  %v2735_v47 = vadd.f32 -1.0, %v1610_v22  ;;  %3016 = vmatprep.subr.mxu0 %v1928_v3 }
 0x2ad   : > { %v1612_v48 = vmul.f32 %v3675_v35, %v3720_v23  ;;  %v3735_v57 = vadd.f32 1.0, %v1501_v38  ;;  %v2738_v62 = vadd.f32 -1.0, %v1613_v34  ;;  %v1615_v63 = vmul.f32 %v3675_v35, %v3726_v36  ;;  %3017 = vmatpush3.msra.mxu0 %v1928_v3 }
 0x2ae   : > { %v1614_v1 = vmul.f32 %v3675_v35, %v3728_v41  ;;  %v1657_v6 = vmax.f32 %v1640_v46, 0.0  ;;  %v1642_v7 = vmul.f32 0.5, %v2735_v47 }
 0x2af   : > { %1741 = vrot.lane.b32.xlu1 %v1698_v26, %s3242_s28  ;;  %1739 = vrot.lane.b32.xlu0 %v1697_v27, %s3242_s28  ;;  %v1653_v26 = vmax.f32 %v1636_v10, 0.0  ;;  %v2737_v8 = vadd.f32 -1.0, %v1612_v48  ;;  %v1617_v14 = vmul.f32 %v3675_v35, %v3735_v57  ;;  %v1645_v19 = vmul.f32 0.5, %v2738_v62 }
 0x2b0   : > { %v2740_v20 = vadd.f32 -1.0, %v1615_v63  ;;  %v2739_v21 = vadd.f32 -1.0, %v1614_v1 }
 0x2b1   : > { %v2742_v38 = vadd.f32 -1.0, %v1617_v14 }
 0x2b2   : > { %v1647_v34 = vmul.f32 0.5, %v2740_v20 }
 0x2b3   : > { %1745 = vrot.lane.b32.xlu1 %v1700_v28, %s3242_s28  ;;  %1743 = vrot.lane.b32.xlu0 %v1699_v29, %s3242_s28  ;;  %v1656_v29 = vmax.f32 %v1639_v12, 0.0 }
 0x2b7   : > { %1749 = vrot.lane.b32.xlu1 %v1702_v30, %s3242_s28  ;;  %1747 = vrot.lane.b32.xlu0 %v1701_v31, %s3242_s28  ;;  %s2743_s28 = sadd.f32 -1.0, %s1482_s15  ;;  %v2736_v30 = vadd.f32 -1.0, %v1611_v13 }
 0x2b9   : > { %v3707_v4 = vstv %s2743_s28  ;;  %v1643_v56 = vmul.f32 0.5, %v2736_v30 }
 0x2ba   : > { %v1668_v15 = vmin.f32 %v3707_v4, %v1651_v2  ;;  %v1671_v28 = vmin.f32 %v3707_v4, %v1654_v11  ;;  %v1669_v32 = vmin.f32 %v3707_v4, %v1652_v16  ;;  %v1670_v52 = vmin.f32 %v3707_v4, %v1653_v26 }
 0x2bb   : > { %v1673_v55 = vmin.f32 %v3707_v4, %v1656_v29  ;;  %v3742_v2 = vadd.f32 1.0, %v1500_v51  ;;  %v1672_v5 = vmin.f32 %v3707_v4, %v1655_v44  ;;  %v1675_v11 = vmin.f32 %v3707_v4, %v1658_v39 }
 0x2bc   : > { %v1660_v13 = vmax.f32 %v1643_v56, 0.0  ;;  %v1674_v26 = vmin.f32 %v3707_v4, %v1657_v6  ;;  %v1646_v39 = vmul.f32 0.5, %v2739_v21 }
 0x2bd   : > { %v1616_v22 = vmul.f32 %v3675_v35, %v3742_v2 }
 0x2be   : > { %v1677_v30 = vmin.f32 %v3707_v4, %v1660_v13  ;;  %v1663_v58 = vmax.f32 %v1646_v39, 0.0 }
 0x2bf   : > { %v2741_v46 = vadd.f32 -1.0, %v1616_v22 }
 0x2c0   : > { %v1680_v6 = vmin.f32 %v3707_v4, %v1663_v58 }
 0x30d   : > { %v1724_v25 = vpop.permute.xlu1 %1723  ;;  %v1720_v27 = vpop.permute.xlu0 %1719 }
 0x30e   : > { %v1767_v31 = vadd.f32 %v1720_v27, %v1668_v15  ;;  %v1927_v15 = vld [vmem:[%s3359_s29] sm:$0xff]  ;;  %v1769_v16 = vadd.f32 %v1724_v25, %v1670_v52  ;;  %v1659_v27 = vmax.f32 %v1642_v7, 0.0  ;;  %s1483_s29 = sadd.s32 1, %s2709_s0 }
 0x30f   : > { %3018 = vmatprep.subr.mxu0 %v1927_v15  ;;  %s1484_s16 = sld [smem:[#allocation4 + %s1483_s29]] }
 0x310   : > { %1785 = vperm.xlu0 %3170, %v1767_v31   ;;  %3019 = vmatpush3.msra.mxu0 %v1927_v15  ;;  %v1676_v42 = vmin.f32 %v3707_v4, %v1659_v27 }
 0x311   : > { %v1726_v53 = vpop.permute.xlu1 %1725  ;;  %v1722_v54 = vpop.permute.xlu0 %1721 }
 0x312   : > { %v1770_v59 = vadd.f32 %v1726_v53, %v1671_v28  ;;  %v1768_v61 = vadd.f32 %v1722_v54, %v1669_v32  ;;  %v1644_v28 = vmul.f32 0.5, %v2737_v8  ;;  %v1662_v32 = vmax.f32 %v1645_v19, 0.0 }
 0x313   : > { %v1664_v53 = vmax.f32 %v1647_v34, 0.0  ;;  %v1649_v54 = vmul.f32 0.5, %v2742_v38 }
 0x314   : > { %1790 = vperm.xlu1 %3171, %v1768_v61   ;;  %1800 = vperm.xlu0 %3170, %v1770_v59   ;;  %v1661_v44 = vmax.f32 %v1644_v28, 0.0  ;;  %v1679_v52 = vmin.f32 %v3707_v4, %v1662_v32  ;;  %v1648_v59 = vmul.f32 0.5, %v2741_v46 }
 0x315   : > { %v1730_v10 = vpop.permute.xlu1 %1729  ;;  %v1728_v12 = vpop.permute.xlu0 %1727  ;;  %v1681_v1 = vmin.f32 %v3707_v4, %v1664_v53  ;;  %v1666_v3 = vmax.f32 %v1649_v54, 0.0  ;;  %s1485_s18 = scvt.s32.f32 %s1484_s16 }
 0x316   : > { %v1772_v18 = vadd.f32 %v1730_v10, %v1673_v55  ;;  %v1771_v24 = vadd.f32 %v1728_v12, %v1672_v5  ;;  %v1678_v56 = vmin.f32 %v3707_v4, %v1661_v44  ;;  %v1665_v7 = vmax.f32 %v1648_v59, 0.0 }
 0x317   : > { %v1683_v12 = vmin.f32 %v3707_v4, %v1666_v3  ;;  %v3763_v19 = vstv %s1485_s18  ;;  %s2726_s24 = sadd.f32 -1.0, %s1485_s18 }
 0x318   : > { %1795 = vperm.xlu1 %3171, %v1769_v16   ;;  %1810 = vperm.xlu0 %3170, %v1772_v18   ;;  %v1682_v14 = vmin.f32 %v3707_v4, %v1665_v7  ;;  %v1525_v20 = vmul.f32 %v3763_v19, %v3703_v60  ;;  %v1528_v60 = vmul.f32 %v3763_v19, %v3705_v0 }
 0x319   : > { %v1734_v29 = vpop.permute.xlu1 %1733  ;;  %v1732_v25 = vpop.permute.xlu0 %1731  ;;  %v3769_v28 = vstv %s2726_s24  ;;  %v1530_v34 = vmul.f32 %v3763_v19, %v3716_v17  ;;  %v1526_v38 = vmul.f32 %v3763_v19, %v3691_v49  ;;  %v1531_v39 = vmul.f32 %v3763_v19, %v3728_v41 }
 0x31a   : > { %v1774_v31 = vadd.f32 %v1734_v29, %v1675_v11  ;;  %v1773_v35 = vadd.f32 %v1732_v25, %v1674_v26  ;;  %v2716_v22 = vadd.f32 -1.0, %v1525_v20  ;;  %v1527_v26 = vmul.f32 %v3763_v19, %v3711_v9  ;;  %v3805_v20 = vld [vmem:[%s3365_s17 + $0x78] sm:$0xff] }
 0x31b   : > { %v3244_v25 = vmov 0   ;;  %v2719_v32 = vadd.f32 -1.0, %v1528_v60  ;;  %v1529_v9 = vmul.f32 %v3763_v19, %v3720_v23  ;;  %v1519_v0 = vmul.f32 %v3763_v19, %v3673_v33  ;;  %3044 = vmatprep.subr.mxu0 %v3805_v20  ;;  %3100 = vmatprep.subr.mxu1 %v3805_v20 }
 0x31c   : > { %1805 = vperm.xlu1 %3171, %v1771_v24   ;;  %1820 = vperm.xlu0 %3170, %v1774_v31   ;;  %v1557_v24 = vmul.f32 0.5, %v2716_v22  ;;  %v2718_v27 = vadd.f32 -1.0, %v1527_v26  ;;  %v2721_v23 = vadd.f32 -1.0, %v1530_v34  ;;  %v1520_v41 = vmul.f32 %v3763_v19, %v3681_v40 }
 0x31d   : > { %v1738_v47 = vpop.permute.xlu1 %1737  ;;  %v1736_v48 = vpop.permute.xlu0 %1735  ;;  %v1560_v44 = vmul.f32 0.5, %v2719_v32  ;;  %v2720_v46 = vadd.f32 -1.0, %v1529_v9  ;;  %v2710_v17 = vadd.f32 -1.0, %v1519_v0  ;;  %v1533_v3 = vmul.f32 %v3763_v19, %v3742_v2  ;;  %3116 = vmatpush3.msra.mxu1 %v3805_v20  ;;  %v3821_v32 = vld [vmem:[%s3365_s17 + $0x68] sm:$0xff]  ;;  %v3826_v9 = vld [vmem:[%s3365_s17 + $0x60] sm:$0xff] }
 0x31e   : > { %v1776_v51 = vadd.f32 %v1738_v47, %v1677_v30  ;;  %v1775_v55 = vadd.f32 %v1736_v48, %v1676_v42  ;;  %v1574_v4 = vmax.f32 %v1557_v24, 0.0  ;;  %v1559_v30 = vmul.f32 0.5, %v2718_v27  ;;  %v3815_v27 = vld [vmem:[%s3365_s17 + $0x70] sm:$0xff] }
 0x31f   : > { %v2717_v47 = vadd.f32 -1.0, %v1526_v38  ;;  %v2722_v48 = vadd.f32 -1.0, %v1531_v39  ;;  %v1561_v49 = vmul.f32 0.5, %v2720_v46  ;;  %v1551_v33 = vmul.f32 0.5, %v2710_v17  ;;  %3101 = vmatprep.subr.mxu1 %v3815_v27  ;;  %v3850_v17 = vld [vmem:[%s3365_s17 + $0x40] sm:$0xff] }
 0x320   : > { %1815 = vperm.xlu1 %3171, %v1773_v35   ;;  %1830 = vperm.xlu0 %3170, %v1776_v51   ;;  %v1591_v29 = vmin.f32 %v3769_v28, %v1574_v4  ;;  %v1576_v31 = vmax.f32 %v1559_v30, 0.0  ;;  %v1532_v35 = vmul.f32 %v3763_v19, %v3726_v36  ;;  %v1577_v51 = vmax.f32 %v1560_v44, 0.0  ;;  %v3838_v44 = vld [vmem:[%s3365_s17 + $0x50] sm:$0xff] }
 0x321   : > { %v1742_v61 = vpop.permute.xlu1 %1741  ;;  %v1740_v62 = vpop.permute.xlu0 %1739  ;;  %v1558_v53 = vmul.f32 0.5, %v2717_v47  ;;  %v2711_v58 = vadd.f32 -1.0, %v1520_v41  ;;  %v1521_v7 = vmul.f32 %v3763_v19, %v3683_v43  ;;  %3117 = vmatpush3.msra.mxu1 %v3815_v27  ;;  %v3866_v41 = vld [vmem:[%s3365_s17 + $0x28] sm:$0xff] }
 0x322   : > { %v1778_v63 = vadd.f32 %v1742_v61, %v1679_v52  ;;  %v1777_v5 = vadd.f32 %v1740_v62, %v1678_v56  ;;  %v1593_v42 = vmin.f32 %v3769_v28, %v1576_v31  ;;  %v1562_v52 = vmul.f32 0.5, %v2721_v23  ;;  %3102 = vmatprep.subr.mxu1 %v3821_v32 }
 0x323   : > { %v2723_v54 = vadd.f32 -1.0, %v1532_v35  ;;  %v1594_v36 = vmin.f32 %v3769_v28, %v1577_v51  ;;  %v1563_v56 = vmul.f32 0.5, %v2722_v48  ;;  %v1575_v59 = vmax.f32 %v1558_v53, 0.0  ;;  %3118 = vmatpush3.msra.mxu1 %v3821_v32  ;;  %v3845_v48 = vld [vmem:[%s3365_s17 + $0x48] sm:$0xff]  ;;  %v3876_v53 = vld [vmem:[%s3365_s17 + $0x18] sm:$0xff] }
 0x324   : > { %1825 = vperm.xlu1 %3171, %v1775_v55   ;;  %1840 = vperm.xlu0 %3170, %v1778_v63   ;;  %v1578_v55 = vmax.f32 %v1561_v49, 0.0  ;;  %v1568_v61 = vmax.f32 %v1551_v33, 0.0  ;;  %v1579_v63 = vmax.f32 %v1562_v52, 0.0  ;;  %v3856_v49 = vld [vmem:[%s3365_s17 + $0x38] sm:$0xff]  ;;  %v3861_v52 = vld [vmem:[%s3365_s17 + $0x30] sm:$0xff]  ;;  %v1684_v33 = vlaneseq }
 0x325   : > { %v1746_v8 = vpop.permute.xlu1 %1745  ;;  %v1744_v10 = vpop.permute.xlu0 %1743  ;;  %v1592_v40 = vmin.f32 %v3769_v28, %v1575_v59  ;;  %3103 = vmatprep.subr.mxu1 %v3826_v9 }
 0x326   : > { %v1780_v11 = vadd.f32 %v1746_v8, %v1681_v1  ;;  %v1779_v13 = vadd.f32 %v1744_v10, %v1680_v6  ;;  %v1595_v62 = vmin.f32 %v3769_v28, %v1578_v55  ;;  %v1552_v1 = vmul.f32 0.5, %v2711_v58  ;;  %3119 = vmatpush3.msra.mxu1 %v3826_v9 }
 0x327   : > { %v1564_v6 = vmul.f32 0.5, %v2723_v54  ;;  %v1585_v8 = vmin.f32 %v3769_v28, %v1568_v61  ;;  %v1596_v2 = vmin.f32 %v3769_v28, %v1579_v63  ;;  %v1685_v54 = vand.u32 127, %v1684_v33 }
 0x328   : > { %1835 = vperm.xlu1 %3171, %v1777_v5   ;;  %1850 = vperm.xlu0 %3170, %v1780_v11   ;;  %v1580_v5 = vmax.f32 %v1563_v56, 0.0  ;;  %v1569_v10 = vmax.f32 %v1552_v1, 0.0  ;;  %v1522_v11 = vmul.f32 %v3763_v19, %v3677_v37 }
 0x329   : > { %v1750_v15 = vpop.permute.xlu1 %1749  ;;  %v1748_v16 = vpop.permute.xlu0 %1747  ;;  %v1581_v43 = vmax.f32 %v1564_v6, 0.0 }
 0x32a   : > { %v1782_v18 = vadd.f32 %v1750_v15, %v1683_v12  ;;  %v1781_v21 = vadd.f32 %v1748_v16, %v1682_v14  ;;  %v1523_v12 = vmul.f32 %v3763_v19, %v3693_v50  ;;  %v2712_v14 = vadd.f32 -1.0, %v1521_v7 }
 0x32b   : > { %v1534_v15 = vmul.f32 %v3763_v19, %v3735_v57  ;;  %v2713_v16 = vadd.f32 -1.0, %v1522_v11  ;;  %v1586_v37 = vmin.f32 %v3769_v28, %v1569_v10  ;;  %v1524_v50 = vmul.f32 %v3763_v19, %v3687_v45 }
 0x32c   : > { %1845 = vperm.xlu1 %3171, %v1779_v13   ;;  %1860 = vperm.xlu0 %3170, %v1782_v18   ;;  %v2724_v13 = vadd.f32 -1.0, %v1533_v3  ;;  %v1553_v18 = vmul.f32 0.5, %v2712_v14  ;;  %v2714_v22 = vadd.f32 -1.0, %v1523_v12  ;;  %v1597_v24 = vmin.f32 %v3769_v28, %v1580_v5 }
 0x32d   : > { %v2725_v4 = vadd.f32 -1.0, %v1534_v15  ;;  %v2715_v30 = vadd.f32 -1.0, %v1524_v50  ;;  %v1598_v60 = vmin.f32 %v3769_v28, %v1581_v43 }
 0x32e   : > { %v1565_v57 = vmul.f32 0.5, %v2724_v13  ;;  %v1570_v26 = vmax.f32 %v1553_v18, 0.0  ;;  %v1555_v19 = vmul.f32 0.5, %v2714_v22 }
 0x32f   : > { %v1566_v31 = vmul.f32 0.5, %v2725_v4  ;;  %v1556_v39 = vmul.f32 0.5, %v2715_v30 }
 0x330   : > { %1855 = vperm.xlu1 %3171, %v1781_v21   ;;  %3173 = vset.pattern.permute.xlu0 %v3244_v25  ;;  %v1554_v21 = vmul.f32 0.5, %v2713_v16  ;;  %v1572_v38 = vmax.f32 %v1555_v19, 0.0 }
 0x331   : > { %2169 = vperm.xlu0 %3173, %v1592_v40   ;;  %v1583_v35 = vmax.f32 %v1566_v31, 0.0  ;;  %v1573_v23 = vmax.f32 %v1556_v39, 0.0 }
 0x332   : > { %v1571_v45 = vmax.f32 %v1554_v21, 0.0  ;;  %v1589_v46 = vmin.f32 %v3769_v28, %v1572_v38 }
 0x333   : > { %v1600_v47 = vmin.f32 %v3769_v28, %v1583_v35  ;;  %v1590_v51 = vmin.f32 %v3769_v28, %v1573_v23 }
 0x334   : > { %3172 = vset.pattern.permute.xlu1 %v3244_v25  ;;  %v1582_v25 = vmax.f32 %v1565_v57, 0.0  ;;  %v1588_v34 = vmin.f32 %v3769_v28, %v1571_v45 }
 0x335   : > { %2164 = vperm.xlu1 %3172, %v1591_v29   ;;  %2134 = vperm.xlu0 %3173, %v1585_v8   ;;  %v1587_v29 = vmin.f32 %v3769_v28, %v1570_v26 }
 0x336   : > { %v1599_v0 = vmin.f32 %v3769_v28, %v1582_v25  ;;  %v3871_v28 = vld [vmem:[%s3365_s17 + $0x20] sm:$0xff] }
 0x339   : > { %2174 = vperm.xlu1 %3172, %v1593_v42   ;;  %2139 = vperm.xlu0 %3173, %v1586_v37   ;;  %v3833_v42 = vld [vmem:[%s3365_s17 + $0x58] sm:$0xff] }
 0x33a   : > { %3104 = vmatprep.subr.mxu1 %v3833_v42 }
 0x33b   : > { %3120 = vmatpush3.msra.mxu1 %v3833_v42 }
 0x33c   : > { %3105 = vmatprep.subr.mxu1 %v3838_v44 }
 0x33d   : > { %2179 = vperm.xlu1 %3172, %v1594_v36   ;;  %2144 = vperm.xlu0 %3173, %v1587_v29   ;;  %v3881_v36 = vcvt.s32.f32 %v1685_v54 }
 0x33e   : > { %3121 = vmatpush3.msra.mxu1 %v3838_v44 }
 0x33f   : > { %3106 = vmatprep.subr.mxu1 %v3845_v48 }
 0x340   : > { %3122 = vmatpush3.msra.mxu1 %v3845_v48 }
 0x341   : > { %2184 = vperm.xlu1 %3172, %v1595_v62   ;;  %2149 = vperm.xlu0 %3173, %v1588_v34  }
 0x342   : > { %3107 = vmatprep.subr.mxu1 %v3850_v17 }
 0x343   : > { %3123 = vmatpush3.msra.mxu1 %v3850_v17 }
 0x344   : > { %3108 = vmatprep.subr.mxu1 %v3856_v49 }
 0x345   : > { %2189 = vperm.xlu1 %3172, %v1596_v2   ;;  %2154 = vperm.xlu0 %3173, %v1589_v46  }
 0x346   : > { %3124 = vmatpush3.msra.mxu1 %v3856_v49 }
 0x347   : > { %3109 = vmatprep.subr.mxu1 %v3861_v52 }
 0x348   : > { %3125 = vmatpush3.msra.mxu1 %v3861_v52 }
 0x349   : > { %2194 = vperm.xlu1 %3172, %v1597_v24   ;;  %2159 = vperm.xlu0 %3173, %v1590_v51  }
 0x34a   : > { %3110 = vmatprep.subr.mxu1 %v3866_v41 }
 0x34b   : > { %3126 = vmatpush3.msra.mxu1 %v3866_v41 }
 0x34c   : > { %3111 = vmatprep.subr.mxu1 %v3871_v28 }
 0x34d   : > { %2199 = vperm.xlu1 %3172, %v1598_v60   ;;  %3127 = vmatpush3.msra.mxu1 %v3871_v28 }
 0x34e   : > { %3112 = vmatprep.subr.mxu1 %v3876_v53 }
 0x34f   : > { %3128 = vmatpush3.msra.mxu1 %v3876_v53 }
 0x351   : > { %2204 = vperm.xlu1 %3172, %v1599_v0  }
 0x355   : > { %2209 = vperm.xlu1 %3172, %v1600_v47  }
 0x38b   : > { %v1786_v55 = vpop.permute.xlu0 %1785 }
 0x38c   : > { %v1863_v56 = vsub.f32 %v3881_v36, %v1786_v55 }
 0x38e   : > { %v1879_v58 = vand.u32 2147483647, %v1863_v56 }
 0x38f   : > { %v1791_v59 = vpop.permute.xlu1 %1790  ;;  %v1801_v61 = vpop.permute.xlu0 %1800 }
 0x390   : > { %v1895_v62 = vsub.f32 1.0, %v1879_v58  ;;  %v1864_v63 = vsub.f32 %v3881_v36, %v1791_v59  ;;  %v1866_v1 = vsub.f32 %v3881_v36, %v1801_v61 }
 0x392   : > { %v1880_v3 = vand.u32 2147483647, %v1864_v63  ;;  %v1911_v40 = vmax.f32 %v1895_v62, 0.0  ;;  %v1882_v5 = vand.u32 2147483647, %v1866_v1 }
 0x393   : > { %v1796_v6 = vpop.permute.xlu1 %1795  ;;  %v1811_v7 = vpop.permute.xlu0 %1810 }
 0x394   : > { %v1896_v8 = vsub.f32 1.0, %v1880_v3  ;;  %v1865_v10 = vsub.f32 %v3881_v36, %v1796_v6  ;;  %v1868_v11 = vsub.f32 %v3881_v36, %v1811_v7  ;;  %3020 = vmatprep.mubr.msk.f32.mxu0 %vm1931_vm5, %v1911_v40  ;;  %v1898_v13 = vsub.f32 1.0, %v1882_v5 }
 0x396   : > { %v1912_v12 = vmax.f32 %v1896_v8, 0.0  ;;  %v1881_v2 = vand.u32 2147483647, %v1865_v10  ;;  %v1884_v14 = vand.u32 2147483647, %v1868_v11  ;;  %v1914_v50 = vmax.f32 %v1898_v13, 0.0 }
 0x397   : > { %v1806_v15 = vpop.permute.xlu1 %1805  ;;  %v1821_v16 = vpop.permute.xlu0 %1820 }
 0x398   : > { %v1897_v43 = vsub.f32 1.0, %v1881_v2  ;;  %v1867_v18 = vsub.f32 %v3881_v36, %v1806_v15  ;;  %v1870_v37 = vsub.f32 %v3881_v36, %v1821_v16  ;;  %3021 = vmatmul.mubr.msk.f32.vlgmr.msra.gmra.mxu0 %vm1931_vm5, %v1912_v12  ;;  %v1900_v24 = vsub.f32 1.0, %v1884_v14  ;;  %v2309_v14 = vld [vmem:[%s3365_s17 + $0x8] sm:$0xff] }
 0x399   : > { %3045 = vmatpush3.msra.mxu0 %v3805_v20 }
 0x39a   : > { %v1913_v21 = vmax.f32 %v1897_v43, 0.0  ;;  %v1883_v22 = vand.u32 2147483647, %v1867_v18  ;;  %3046 = vmatprep.subr.mxu0 %v3815_v27  ;;  %v1886_v57 = vand.u32 2147483647, %v1870_v37  ;;  %v1916_v60 = vmax.f32 %v1900_v24, 0.0 }
 0x39b   : > { %v1816_v26 = vpop.permute.xlu1 %1815  ;;  %v1831_v4 = vpop.permute.xlu0 %1830  ;;  %3047 = vmatpush3.msra.mxu0 %v3815_v27 }
 0x39c   : > { %v1899_v29 = vsub.f32 1.0, %v1883_v22  ;;  %v1869_v45 = vsub.f32 %v3881_v36, %v1816_v26  ;;  %v1872_v19 = vsub.f32 %v3881_v36, %v1831_v4  ;;  %3023 = vmatprep.mubr.msk.f32.mxu0 %vm1931_vm5, %v1913_v21  ;;  %3048 = vmatprep.subr.mxu0 %v3821_v32  ;;  %v1902_v25 = vsub.f32 1.0, %v1886_v57 }
 0x39d   : > { %3024 = vmatmul.mubr.msk.f32.gmra.mxu0 %vm1931_vm5, %v1914_v50  ;;  %v3948_v50 = vld [vmem:[%s545_s26] ss:$0 sm:$0xff]  ;;  %s2510_s26 = sshll.u32 %s3245_s22, 4  ;;  %s2511_s26 = int_to_ptr.vmem [resolvable:$true] %s2510_s26 }
 0x39e   : > { %v1915_v20 = vmax.f32 %v1899_v29, 0.0  ;;  %v1885_v30 = vand.u32 2147483647, %v1869_v45  ;;  %3049 = vmatpush3.msra.mxu0 %v3821_v32  ;;  %v1888_v31 = vand.u32 2147483647, %v1872_v19  ;;  %v1918_v46 = vmax.f32 %v1902_v25, 0.0  ;;  %p3193_p1 = scmp.lt.s32.totalorder %s2511_s26, %s2511_s26 }
 0x39f   : > { %v1826_v34 = vpop.permute.xlu1 %1825  ;;  %v1841_v27 = vpop.permute.xlu0 %1840  ;;  %3050 = vmatprep.subr.mxu0 %v3826_v9  ;;  %s3186_s30 = scalar_lea.vmem %s2511_s26, 2048 }
 0x3a0   : > { %v1901_v38 = vsub.f32 1.0, %v1885_v30  ;;  %v1871_v39 = vsub.f32 %v3881_v36, %v1826_v34  ;;  %v1874_v0 = vsub.f32 %v3881_v36, %v1841_v27  ;;  %3026 = vmatprep.mubr.msk.f32.mxu0 %vm1931_vm5, %v1915_v20  ;;  %3051 = vmatpush3.msra.mxu0 %v3826_v9  ;;  %v1904_v23 = vsub.f32 1.0, %v1888_v31  ;;  %p3187_p12 = scmp.ne.s32.totalorder %s2511_s26, %s3186_s30  ;;  %p3194_p2 = scmp.lt.s32.totalorder %s3186_s30, %s3186_s30 }
 0x3a1   : > { %3027 = vmatmul.mubr.msk.f32.gmra.mxu0 %vm1931_vm5, %v1916_v60  ;;  %3052 = vmatprep.subr.mxu0 %v3833_v42 }
 0x3a2   : > { %v1917_v32 = vmax.f32 %v1901_v38, 0.0  ;;  %v1887_v35 = vand.u32 2147483647, %v1871_v39  ;;  %3053 = vmatpush3.msra.mxu0 %v3833_v42  ;;  %v1890_v47 = vand.u32 2147483647, %v1874_v0  ;;  %v1920_v58 = vmax.f32 %v1904_v23, 0.0  ;;  %p3195_p3 = por %p3194_p2, %p3193_p1 }
 0x3a3   : > { %v1836_v51 = vpop.permute.xlu1 %1835  ;;  %v1851_v33 = vpop.permute.xlu0 %1850  ;;  %3054 = vmatprep.subr.mxu0 %v3838_v44 }
 0x3a4   : > { %v1903_v54 = vsub.f32 1.0, %v1887_v35  ;;  %v1873_v55 = vsub.f32 %v3881_v36, %v1836_v51  ;;  %v1876_v9 = vsub.f32 %v3881_v36, %v1851_v33  ;;  %3029 = vmatprep.mubr.msk.f32.mxu0 %vm1931_vm5, %v1917_v32  ;;  %3055 = vmatpush3.msra.mxu0 %v3838_v44  ;;  %v1906_v59 = vsub.f32 1.0, %v1890_v47 }
 0x3a5   : > { %3030 = vmatmul.mubr.msk.f32.gmra.mxu0 %vm1931_vm5, %v1918_v46  ;;  %3056 = vmatprep.subr.mxu0 %v3845_v48 }
 0x3a6   : > { %v1919_v42 = vmax.f32 %v1903_v54, 0.0  ;;  %v1889_v56 = vand.u32 2147483647, %v1873_v55  ;;  %3057 = vmatpush3.msra.mxu0 %v3845_v48  ;;  %v1892_v61 = vand.u32 2147483647, %v1876_v9  ;;  %v1922_v5 = vmax.f32 %v1906_v59, 0.0 }
 0x3a7   : > { %v1846_v62 = vpop.permute.xlu1 %1845  ;;  %v1861_v63 = vpop.permute.xlu0 %1860  ;;  %3058 = vmatprep.subr.mxu0 %v3850_v17 }
 0x3a8   : > { %v1905_v1 = vsub.f32 1.0, %v1889_v56  ;;  %v1875_v3 = vsub.f32 %v3881_v36, %v1846_v62  ;;  %v1878_v44 = vsub.f32 %v3881_v36, %v1861_v63  ;;  %3032 = vmatprep.mubr.msk.f32.mxu0 %vm1931_vm5, %v1919_v42  ;;  %3059 = vmatpush3.msra.mxu0 %v3850_v17  ;;  %v1908_v6 = vsub.f32 1.0, %v1892_v61 }
 0x3a9   : > { %3033 = vmatmul.mubr.msk.f32.gmra.mxu0 %vm1931_vm5, %v1920_v58  ;;  %3060 = vmatprep.subr.mxu0 %v3856_v49 }
 0x3aa   : > { %v1921_v48 = vmax.f32 %v1905_v1, 0.0  ;;  %v1891_v40 = vand.u32 2147483647, %v1875_v3  ;;  %3061 = vmatpush3.msra.mxu0 %v3856_v49  ;;  %v1894_v7 = vand.u32 2147483647, %v1878_v44  ;;  %v1924_v12 = vmax.f32 %v1908_v6, 0.0 }
 0x3ab   : > { %v1856_v8 = vpop.permute.xlu1 %1855  ;;  %3062 = vmatprep.subr.mxu0 %v3861_v52 }
 0x3ac   : > { %v1907_v10 = vsub.f32 1.0, %v1891_v40  ;;  %v1877_v11 = vsub.f32 %v3881_v36, %v1856_v8  ;;  %3035 = vmatprep.mubr.msk.f32.mxu0 %vm1931_vm5, %v1921_v48  ;;  %3063 = vmatpush3.msra.mxu0 %v3861_v52  ;;  %v1910_v2 = vsub.f32 1.0, %v1894_v7 }
 0x3ad   : > { %3036 = vmatmul.mubr.msk.f32.gmra.mxu0 %vm1931_vm5, %v1922_v5  ;;  %3064 = vmatprep.subr.mxu0 %v3866_v41 }
 0x3ae   : > { %v1923_v17 = vmax.f32 %v1907_v10, 0.0  ;;  %v1893_v49 = vand.u32 2147483647, %v1877_v11  ;;  %3065 = vmatpush3.msra.mxu0 %v3866_v41  ;;  %v1926_v36 = vmax.f32 %v1910_v2, 0.0  ;;  %v2310_v41 = vld [vmem:[%s3365_s17 + $0x10] sm:$0xff] }
 0x3af   : > { %3066 = vmatprep.subr.mxu0 %v3871_v28  ;;  %3113 = vmatprep.subr.mxu1 %v2310_v41 }
 0x3b0   : > { %v1909_v13 = vsub.f32 1.0, %v1893_v49  ;;  %3038 = vmatprep.mubr.msk.f32.mxu0 %vm1931_vm5, %v1923_v17  ;;  %3067 = vmatpush3.msra.mxu0 %v3871_v28  ;;  %v2308_v28 = vld [vmem:[%s3365_s17] sm:$0xff]  ;;  %v2165_v16 = vpop.permute.xlu1 %2164  ;;  %s4008_s17 = sadd.s32 4294967295, %s3238_s20  }
 0x3b1   : > { %3039 = vmatmul.mubr.msk.f32.gmra.mxu0 %vm1931_vm5, %v1924_v12  ;;  %3068 = vmatprep.subr.mxu0 %v3876_v53  ;;  %v2218_v33 = vsub.f32 %v3948_v50, %v2165_v16  ;;  %p3968_p11 = scmp.eq.s32.totalorder %s4008_s17, 1 }
 0x3b2   : > { %v1925_v52 = vmax.f32 %v1909_v13, 0.0  ;;  %3069 = vmatpush3.msra.mxu0 %v3876_v53  ;;  %3129 = vmatpush3.msra.mxu1 %v2310_v41  ;;  %v2170_v53 = vpop.permute.xlu0 %2169 }
 0x3b3   : > { %3070 = vmatprep.subr.mxu0 %v2310_v41  ;;  %3114 = vmatprep.subr.mxu1 %v2309_v14  ;;  %v2219_v9 = vsub.f32 %v3948_v50, %v2170_v53  ;;  %v2234_v1 = vand.u32 2147483647, %v2218_v33  ;;  %p3188_p13 = pnand %p3187_p12, %p3968_p11 }
 0x3b4   : > { %3041 = vmatprep.mubr.msk.f32.mxu0 %vm1931_vm5, %v1925_v52  ;;  %3071 = vmatpush3.msra.mxu0 %v2310_v41  ;;  %v2175_v18 = vpop.permute.xlu1 %2174 }
 0x3b5   : > { %3042 = vmatmul.mubr.msk.f32.gmra.mxu0 %vm1931_vm5, %v1926_v36  ;;  %3072 = vmatprep.subr.mxu0 %v2309_v14  ;;  %v2220_v3 = vsub.f32 %v3948_v50, %v2175_v18  ;;  %v2235_v40 = vand.u32 2147483647, %v2219_v9  ;;  %v2250_v11 = vsub.f32 1.0, %v2234_v1  ;;  %p3189_p0 = pneg %p3188_p13 }
 0x3b6   : > { %3073 = vmatpush3.msra.mxu0 %v2309_v14  ;;  %3130 = vmatpush3.msra.mxu1 %v2309_v14  ;;  %v2135_v15 = vpop.permute.xlu0 %2134 }
 0x3b7   : > { %3074 = vmatprep.subr.mxu0 %v2308_v28  ;;  %3115 = vmatprep.subr.mxu1 %v2308_v28  ;;  %v2212_v57 = vsub.f32 %v3948_v50, %v2135_v15  ;;  %v2236_v17 = vand.u32 2147483647, %v2220_v3  ;;  %v2251_v36 = vsub.f32 1.0, %v2235_v40  ;;  %v2266_v18 = vmax.f32 %v2250_v11, 0.0  ;;  %p3196_p4 = pnand %p3195_p3, %p3189_p0 }
 0x3b8   : > { %3075 = vmatpush3.msra.mxu0 %v2308_v28  ;;  %3131 = vmatpush3.msra.mxu1 %v2308_v28  ;;  %v2180_v21 = vpop.permute.xlu1 %2179 }
 0x3b9   : > { %v2228_v29 = vand.u32 2147483647, %v2212_v57  ;;  %v2221_v48 = vsub.f32 %v3948_v50, %v2180_v21  ;;  %v2252_v15 = vsub.f32 1.0, %v2236_v17 }
 0x3ba   : > { %v2140_v43 = vpop.permute.xlu0 %2139 }
 0x3bb   : > { %v2213_v26 = vsub.f32 %v3948_v50, %v2140_v43  ;;  %v2244_v25 = vsub.f32 1.0, %v2228_v29  ;;  %v2237_v13 = vand.u32 2147483647, %v2221_v48 }
 0x3bc   : > { %v2185_v24 = vpop.permute.xlu1 %2184 }
 0x3bd   : > { %v2229_v19 = vand.u32 2147483647, %v2213_v26  ;;  %v2260_v32 = vmax.f32 %v2244_v25, 0.0  ;;  %v2222_v49 = vsub.f32 %v3948_v50, %v2185_v24 }
 0x3be   : > { %v2145_v37 = vpop.permute.xlu0 %2144 }
 0x3bf   : > { %v2214_v20 = vsub.f32 %v3948_v50, %v2145_v37  ;;  %v2245_v31 = vsub.f32 1.0, %v2229_v19  ;;  %v2238_v16 = vand.u32 2147483647, %v2222_v49  ;;  %v2253_v37 = vsub.f32 1.0, %v2237_v13  ;;  %v2279_v49 = vld [vmem:[#allocation5 + $0x18] sm:$0xff] }
 0x3c0   : > { %v2190_v45 = vpop.permute.xlu1 %2189  ;;  %v2268_v19 = vmax.f32 %v2252_v15, 0.0 }
 0x3c1   : > { %v2230_v34 = vand.u32 2147483647, %v2214_v20  ;;  %v2261_v35 = vmax.f32 %v2245_v31, 0.0  ;;  %v2223_v52 = vsub.f32 %v3948_v50, %v2190_v45  ;;  %v2254_v20 = vsub.f32 1.0, %v2238_v16  ;;  %v2283_v16 = vld [vmem:[#allocation5 + $0x38] sm:$0xff] }
 0x3c2   : > { %v2150_v22 = vpop.permute.xlu0 %2149  ;;  %v2269_v25 = vmax.f32 %v2253_v37, 0.0  ;;  %v2282_v37 = vld [vmem:[#allocation5 + $0x30] sm:$0xff] }
 0x3c3   : > { %v2215_v30 = vsub.f32 %v3948_v50, %v2150_v22  ;;  %v2246_v46 = vsub.f32 1.0, %v2230_v34  ;;  %v2239_v21 = vand.u32 2147483647, %v2223_v52  ;;  %v2267_v22 = vmax.f32 %v2251_v36, 0.0  ;;  %v2281_v36 = vld [vmem:[#allocation5 + $0x28] sm:$0xff] }
 0x3c4   : > { %v2195_v39 = vpop.permute.xlu1 %2194 }
 0x3c5   : > { %v2231_v27 = vand.u32 2147483647, %v2215_v30  ;;  %v2262_v58 = vmax.f32 %v2246_v46, 0.0  ;;  %v2224_v43 = vsub.f32 %v3948_v50, %v2195_v39  ;;  %v2255_v31 = vsub.f32 1.0, %v2239_v21 }
 0x3c6   : > { %v2155_v4 = vpop.permute.xlu0 %2154 }
 0x3c7   : > { %v2216_v0 = vsub.f32 %v3948_v50, %v2155_v4  ;;  %v2247_v47 = vsub.f32 1.0, %v2231_v27  ;;  %v2240_v30 = vand.u32 2147483647, %v2224_v43 }
 0x3c8   : > { %v2200_v56 = vpop.permute.xlu1 %2199 }
 0x3c9   : > { %v2232_v54 = vand.u32 2147483647, %v2216_v0  ;;  %v2263_v61 = vmax.f32 %v2247_v47, 0.0  ;;  %v2225_v24 = vsub.f32 %v3948_v50, %v2200_v56  ;;  %v2256_v46 = vsub.f32 1.0, %v2240_v30 }
 0x3ca   : > { %v2160_v60 = vpop.permute.xlu0 %2159  ;;  %v2271_v47 = vmax.f32 %v2255_v31, 0.0 }
 0x3cb   : > { %v2217_v38 = vsub.f32 %v3948_v50, %v2160_v60  ;;  %v2248_v44 = vsub.f32 1.0, %v2232_v54  ;;  %v2241_v34 = vand.u32 2147483647, %v2225_v24  ;;  %v2272_v56 = vmax.f32 %v2256_v46, 0.0  ;;  %v2285_v24 = vld [vmem:[#allocation5 + $0x48] sm:$0xff] }
 0x3cc   : > { %v2205_v12 = vpop.permute.xlu1 %2204 }
 0x3cd   : > { %v2233_v51 = vand.u32 2147483647, %v2217_v38  ;;  %v2264_v2 = vmax.f32 %v2248_v44, 0.0  ;;  %v2226_v60 = vsub.f32 %v3948_v50, %v2205_v12 }
 0x3cf   : > { %v2249_v62 = vsub.f32 1.0, %v2233_v51  ;;  %v2257_v51 = vsub.f32 1.0, %v2241_v34  ;;  %v2289_v34 = vld [vmem:[#allocation5 + $0x68] sm:$0xff] }
 0x3d0   : > { %v2210_v26 = vpop.permute.xlu1 %2209 }
 0x3d1   : > { %v2265_v7 = vmax.f32 %v2249_v62, 0.0  ;;  %v2227_v27 = vsub.f32 %v3948_v50, %v2210_v26  ;;  %v2273_v50 = vmax.f32 %v2257_v51, 0.0 }
 0x3d3   : > { %v2243_v33 = vand.u32 2147483647, %v2227_v27 }
 0x458   : > { %v3022_v23 = vpop.f32.mrf.mxu0 }
 0x459   : > { %v2293_v59 = vmul.f32 %v3022_v23, %v2261_v35  ;;  %v2270_v35 = vmax.f32 %v2254_v20, 0.0  ;;  %v2242_v23 = vand.u32 2147483647, %v2226_v60  ;;  %v2286_v60 = vld [vmem:[#allocation5 + $0x50] sm:$0xff] }
 0x45a   : > { %v2046_v55 = vpop.f32.mrf.mxu0 }
 0x45b   : > { %v2292_v42 = vmul.f32 %v2260_v32, %v2046_v55 }
 0x45d   : > { %v3025_v63 = vpop.f32.mrf.mxu0  ;;  %3076 = vmatprep.mubr.f32.mxu0 %v2292_v42 }
 0x45e   : > { %3077 = vmatmul.mubr.f32.vlgmr.msra.gmra.mxu0 %v2293_v59  ;;  %v2295_v8 = vmul.f32 %v3025_v63, %v2263_v61  ;;  %v2259_v59 = vsub.f32 1.0, %v2243_v33 }
 0x45f   : > { %v2056_v5 = vpop.f32.mrf.mxu0 }
 0x460   : > { %v2294_v6 = vmul.f32 %v2262_v58, %v2056_v5  ;;  %v2258_v58 = vsub.f32 1.0, %v2242_v23  ;;  %v2275_v44 = vmax.f32 %v2259_v59, 0.0 }
 0x461   : > { %v3028_v10 = vpop.f32.mrf.mxu0 }
 0x462   : > { %3079 = vmatprep.mubr.f32.mxu0 %v2294_v6  ;;  %v2297_v28 = vmul.f32 %v3028_v10, %v2265_v7  ;;  %v2274_v3 = vmax.f32 %v2258_v58, 0.0  ;;  %v2277_v6 = vld [vmem:[#allocation5 + $0x8] sm:$0xff] }
 0x463   : > { %v2066_v41 = vpop.f32.mrf.mxu0  ;;  %3080 = vmatmul.mubr.f32.gmra.mxu0 %v2295_v8  ;;  %v2276_v8 = vld [vmem:[#allocation5] sm:$0xff] }
 0x464   : > { %v2296_v14 = vmul.f32 %v2264_v2, %v2066_v41  ;;  %v2278_v2 = vld [vmem:[#allocation5 + $0x10] sm:$0xff] }
 0x465   : > { %v3031_v53 = vpop.f32.mrf.mxu0 }
 0x466   : > { %3082 = vmatprep.mubr.f32.mxu0 %v2296_v14  ;;  %v2299_v29 = vmul.f32 %v3031_v53, %v2267_v22 }
 0x467   : > { %v2076_v57 = vpop.f32.mrf.mxu0  ;;  %3083 = vmatmul.mubr.f32.gmra.mxu0 %v2297_v28  ;;  %v2280_v28 = vld [vmem:[#allocation5 + $0x20] sm:$0xff] }
 0x468   : > { %v2298_v4 = vmul.f32 %v2266_v18, %v2076_v57 }
 0x469   : > { %v3034_v45 = vpop.f32.mrf.mxu0 }
 0x46a   : > { %3085 = vmatprep.mubr.f32.mxu1 %v2298_v4  ;;  %v2301_v0 = vmul.f32 %v3034_v45, %v2269_v25  ;;  %v2284_v4 = vld [vmem:[#allocation5 + $0x40] sm:$0xff] }
 0x46b   : > { %v2086_v38 = vpop.f32.mrf.mxu0  ;;  %3086 = vmatmul.mubr.f32.vlgmr.msra.gmra.mxu1 %v2299_v29 }
 0x46c   : > { %v2300_v39 = vmul.f32 %v2268_v19, %v2086_v38  ;;  %v2287_v19 = vld [vmem:[#allocation5 + $0x58] sm:$0xff] }
 0x46d   : > { %v3037_v32 = vpop.f32.mrf.mxu0 }
 0x46e   : > { %3088 = vmatprep.mubr.f32.mxu1 %v2300_v39  ;;  %v2303_v9 = vmul.f32 %v3037_v32, %v2271_v47  ;;  %v2288_v39 = vld [vmem:[#allocation5 + $0x60] sm:$0xff]  ;;  %v2290_v47 = vld [vmem:[#allocation5 + $0x70] sm:$0xff] }
 0x46f   : > { %v2096_v54 = vpop.f32.mrf.mxu0  ;;  %3089 = vmatmul.mubr.f32.gmra.mxu1 %v2301_v0 }
 0x470   : > { %v2302_v55 = vmul.f32 %v2270_v35, %v2096_v54  ;;  %v2291_v35 = vld [vmem:[#allocation5 + $0x78] sm:$0xff] }
 0x471   : > { %v3040_v42 = vpop.f32.mrf.mxu0 }
 0x472   : > { %3091 = vmatprep.mubr.f32.mxu1 %v2302_v55  ;;  %v2305_v63 = vmul.f32 %v3040_v42, %v2273_v50 }
 0x473   : > { %v2106_v61 = vpop.f32.mrf.mxu0  ;;  %3092 = vmatmul.mubr.f32.gmra.mxu1 %v2303_v9 }
 0x474   : > { %v2304_v62 = vmul.f32 %v2272_v56, %v2106_v61 }
 0x475   : > { %v3043_v1 = vpop.f32.mrf.mxu0 }
 0x476   : > { %3094 = vmatprep.mubr.f32.mxu1 %v2304_v62  ;;  %v2307_v5 = vmul.f32 %v3043_v1, %v2275_v44 }
 0x477   : > { %v2116_v48 = vpop.f32.mrf.mxu0  ;;  %3095 = vmatmul.mubr.f32.gmra.mxu1 %v2305_v63 }
 0x478   : > { %v2306_v40 = vmul.f32 %v2274_v3, %v2116_v48 }
 0x47a   : > { %3097 = vmatprep.mubr.f32.mxu1 %v2306_v40 }
 0x47b   : > { %3098 = vmatmul.mubr.f32.gmra.mxu1 %v2307_v5 }
 0x51e   : > { %v3078_v7 = vpop.f32.mrf.mxu0 }
 0x51f   : > { %v2470_v10 = vadd.f32 %v3078_v7, %v2277_v6 }
 0x520   : > { %v2390_v11 = vpop.f32.mrf.mxu0 }
 0x521   : > { %2486 = vst [vmem:[#allocation5 + $0x8] sm:$0xff] %v2470_v10  ;;  %v2469_v17 = vadd.f32 %v2390_v11, %v2276_v8 }
 0x523   : > { %2485 = vst [vmem:[#allocation5] sm:$0xff] %v2469_v17  ;;  %v3081_v12 = vpop.f32.mrf.mxu0 }
 0x524   : > { %v2472_v13 = vadd.f32 %v3081_v12, %v2279_v49 }
 0x525   : > { %v2400_v52 = vpop.f32.mrf.mxu0 }
 0x526   : > { %2488 = vst [vmem:[#allocation5 + $0x18] sm:$0xff] %v2472_v13  ;;  %v2471_v41 = vadd.f32 %v2400_v52, %v2278_v2 }
 0x527   : > { %v3084_v14 = vpop.f32.mrf.mxu0 }
 0x528   : > { %2487 = vst [vmem:[#allocation5 + $0x10] sm:$0xff] %v2471_v41  ;;  %v2474_v53 = vadd.f32 %v3084_v14, %v2281_v36 }
 0x529   : > { %v2410_v15 = vpop.f32.mrf.mxu0 }
 0x52a   : > { %2490 = vst [vmem:[#allocation5 + $0x28] sm:$0xff] %v2474_v53  ;;  %v2473_v43 = vadd.f32 %v2410_v15, %v2280_v28 }
 0x52b   : > { %v3087_v18 = vpop.f32.mrf.mxu1 }
 0x52c   : > { %2489 = vst [vmem:[#allocation5 + $0x20] sm:$0xff] %v2473_v43  ;;  %v2476_v21 = vadd.f32 %v3087_v18, %v2283_v16 }
 0x52d   : > { %v2420_v22 = vpop.f32.mrf.mxu1 }
 0x52e   : > { %2492 = vst [vmem:[#allocation5 + $0x38] sm:$0xff] %v2476_v21  ;;  %v2475_v57 = vadd.f32 %v2420_v22, %v2282_v37 }
 0x52f   : > { %v3090_v26 = vpop.f32.mrf.mxu1 }
 0x530   : > { %2491 = vst [vmem:[#allocation5 + $0x30] sm:$0xff] %v2475_v57  ;;  %v2478_v29 = vadd.f32 %v3090_v26, %v2285_v24 }
 0x531   : > { %v2430_v45 = vpop.f32.mrf.mxu1 }
 0x532   : > { %2494 = vst [vmem:[#allocation5 + $0x48] sm:$0xff] %v2478_v29  ;;  %v2477_v20 = vadd.f32 %v2430_v45, %v2284_v4 }
 0x533   : > { %v3093_v30 = vpop.f32.mrf.mxu1 }
 0x534   : > { %2493 = vst [vmem:[#allocation5 + $0x40] sm:$0xff] %v2477_v20  ;;  %v2480_v25 = vadd.f32 %v3093_v30, %v2287_v19 }
 0x535   : > { %v2440_v31 = vpop.f32.mrf.mxu1 }
 0x536   : > { %2496 = vst [vmem:[#allocation5 + $0x58] sm:$0xff] %v2480_v25  ;;  %v2479_v27 = vadd.f32 %v2440_v31, %v2286_v60 }
 0x537   : > { %v3096_v38 = vpop.f32.mrf.mxu1 }
 0x538   : > { %2495 = vst [vmem:[#allocation5 + $0x50] sm:$0xff] %v2479_v27  ;;  %v2482_v0 = vadd.f32 %v3096_v38, %v2289_v34 }
 0x539   : > { %v2450_v32 = vpop.f32.mrf.mxu1 }
 0x53a   : > { %2498 = vst [vmem:[#allocation5 + $0x68] sm:$0xff] %v2482_v0  ;;  %v2481_v46 = vadd.f32 %v2450_v32, %v2288_v39 }
 0x53b   : > { %v3099_v23 = vpop.f32.mrf.mxu1 }
 0x53c   : > { %2497 = vst [vmem:[#allocation5 + $0x60] sm:$0xff] %v2481_v46  ;;  %v2484_v51 = vadd.f32 %v3099_v23, %v2291_v35 }
 0x53d   : > { %v2460_v33 = vpop.f32.mrf.mxu1 }
 0x53e   : > { %2500 = vst [vmem:[#allocation5 + $0x78] sm:$0xff] %v2484_v51  ;;  %v2483_v54 = vadd.f32 %v2460_v33, %v2290_v47 }
 0x540   : > { %2499 = vst [vmem:[#allocation5 + $0x70] sm:$0xff] %v2483_v54 }
 0x541   : > { %3199 = shalt.err (!%p3196_p4)
}
 0x542   : > { %s3246_s0 = smov 128   ;;  %s3247_s21 = smov 8  }
 0x543   : > { %3133 = dma.vmem_to_hbm [thread:$0]  (%p3968_p11), %s2511_s26, 2048, %s4006_s14, [#allocation6], %s3246_s0, %s3246_s0, %s3247_s21  }
 0x544   : > { %3225 = dma.done.wait (%p3968_p11), [#allocation6], 2048  }
 0x545   : > { %3227 = vsyncadd (%p3968_p11), [#allocation6], 4294965248 }
 0x546 PF: > { %s31_s20 = sadd.s32 1, %s3238_s20   ;;  %s4010_s29 = sld [smem:[#allocation9_spill]] }
 0x547   : > { %p28_p5 = scmp.ge.s32.totalorder %s31_s20, 4   ;;  %s4011_s18 = smov %s3234_s19 }
 0x549   :  { %30 = sbr.rel (!%p28_p5) target bundleno = 17 (0x11), region = 119 }
 0x54c   : > { %s4012_s19 = smov %s4010_s29 }
 0x54e   :  { %2526 = vsyncpa [#allocation6], 1 }
 0x54f   :  { %2528 = vsyncpa [#allocation6 + $0x1], 1 }

</bundles_post_ra>
